<compile_context>
chip_gen: v6e
topology: v6e:2x2x1
jax: 0.10.0
libtpu: 0.0.40
codegen_flags: <defaults>
</compile_context>

<pallas_src>
import math

import jax
import jax.numpy as jnp
import numpy as np
from jax.experimental import pallas as pl
from jax.experimental.pallas import tpu as pltpu

# ----------------------------- config ---------------------------------------
VOCAB = 100          # vocab size (synthetic)
TYPE_VOCAB = 2       # token type vocab
MAX_POS = 16         # max position embeddings
B, S, H = 2, 8, 32   # batch, seq len, hidden size
NH = 4               # attention heads
HD = H // NH         # head dim
FF = 64              # feed-forward (intermediate) size
NLAYERS = 2          # encoder layers
LN_EPS = 1e-12       # BERT LayerNorm eps
NEG_INF = -1e9


def _layer_norm(x, gamma, beta):
    mu = jnp.mean(x, axis=-1, keepdims=True)
    var = jnp.mean(jnp.square(x - mu), axis=-1, keepdims=True)
    return (x - mu) * jax.lax.rsqrt(var + LN_EPS) * gamma + beta


# ----------------------------- fused Pallas kernel ---------------------------
def fused_encoder_kernel(x_ref, m_ref, embgb_ref, wqkv_ref, bqkv_ref, wo_ref,
                         w1_ref, bb1_ref, w2_ref, vecs_ref, o_ref):
    layer = pl.program_id(1)

    # Layer step 0: embedding LayerNorm.  The hidden state stays resident in
    # the output VMEM block across all layer steps (HBM writeback happens only
    # once per batch row, when the output block index changes).
    @pl.when(layer == 0)
    def _():
        embgb = embgb_ref[...]                                  # (2, H)
        o_ref[0] = _layer_norm(x_ref[0], embgb[0:1], embgb[1:2])

    x = o_ref[0]                                                # (S, H) resident state
    mask_add = m_ref[0]                                         # (1, S) additive mask

    vecs = vecs_ref[0]                                          # (6, H) packed per-layer vectors
    bo, g1, be1 = vecs[0:1], vecs[1:2], vecs[2:3]
    bb2, g2, be2 = vecs[3:4], vecs[4:5], vecs[5:6]

    # ---- multi-head self-attention: fused QKV, head-major batched matmuls ----
    # 1/sqrt(HD) is already folded into the Q weights/bias at pack time.
    wqkv = wqkv_ref[0]                                          # (3*NH, H, HD)
    bqkv = bqkv_ref[0]                                          # (3*NH, 1, HD)
    xb = jnp.broadcast_to(x[None], (3 * NH, S, H))
    qkv = jnp.einsum("nsh,nhd->nsd", xb, wqkv,
                     preferred_element_type=jnp.float32) + bqkv  # (3*NH, S, HD)
    q, k, v = qkv[:NH], qkv[NH:2 * NH], qkv[2 * NH:]

    s = jnp.einsum("nqd,nkd->nqk", q, k,
                   preferred_element_type=jnp.float32)          # (NH, S, S), pre-scaled
    s = s + mask_add[None]                                      # broadcast heads / query rows
    s = s - jnp.max(s, axis=-1, keepdims=True)
    p = jnp.exp(s)
    p = p * pl.reciprocal(jnp.sum(p, axis=-1, keepdims=True), approx=True)

    ctx = jnp.einsum("nqk,nkd->nqd", p, v,
                     preferred_element_type=jnp.float32)        # (NH, S, HD)
    # sum_h ctx_h @ Wo[h-rows]  ==  concat(ctx) @ Wo, without the concatenate.
    # (axis-0 reduce over NH is plain vreg adds, no cross-lane traffic.)
    attn_out = jnp.sum(
        jnp.einsum("nsd,ndh->nsh", ctx, wo_ref[0],
                   preferred_element_type=jnp.float32), axis=0) + bo

    h1 = _layer_norm(x + attn_out, g1, be1)

    # ---- feed-forward ----
    ff = jnp.dot(h1, w1_ref[0], preferred_element_type=jnp.float32) + bb1_ref[0]
    ff = jax.nn.gelu(ff, approximate=True)
    ff = jnp.dot(ff, w2_ref[0], preferred_element_type=jnp.float32) + bb2

    o_ref[0] = _layer_norm(h1 + ff, g2, be2)


_fused_call = pl.pallas_call(
    fused_encoder_kernel,
    out_shape=jax.ShapeDtypeStruct((B, S, H), jnp.float32),
    grid=(B, NLAYERS),
    in_specs=[
        pl.BlockSpec((1, S, H), lambda b, l: (b, 0, 0)),              # embedded x
        pl.BlockSpec((1, 1, S), lambda b, l: (b, 0, 0)),              # additive mask
        pl.BlockSpec((2, H), lambda b, l: (0, 0)),                    # embed LN gamma/beta
        pl.BlockSpec((1, 3 * NH, H, HD), lambda b, l: (l, 0, 0, 0)),  # fused QKV (head-major)
        pl.BlockSpec((1, 3 * NH, 1, HD), lambda b, l: (l, 0, 0, 0)),  # fused QKV bias
        pl.BlockSpec((1, NH, HD, H), lambda b, l: (l, 0, 0, 0)),      # Wo (head-major rows)
        pl.BlockSpec((1, H, FF), lambda b, l: (l, 0, 0)),             # W1
        pl.BlockSpec((1, 1, FF), lambda b, l: (l, 0, 0)),             # b1
        pl.BlockSpec((1, FF, H), lambda b, l: (l, 0, 0)),             # W2
        pl.BlockSpec((1, 6, H), lambda b, l: (l, 0, 0)),              # [bo,g1,be1,bb2,g2,be2]
    ],
    out_specs=pl.BlockSpec((1, S, H), lambda b, l: (b, 0, 0)),
    compiler_params=pltpu.CompilerParams(
        dimension_semantics=("parallel", "arbitrary")),
)


# ----------------------------- parameters -----------------------------------
def init_params(key):
    def w(key, shape, scale=0.02):
        return jax.random.normal(key, shape, jnp.float32) * scale

    keys = jax.random.split(key, 5 + NLAYERS)
    params = {
        "word_emb": w(keys[0], (VOCAB, H)),
        "pos_emb": w(keys[1], (MAX_POS, H)),
        "type_emb": w(keys[2], (TYPE_VOCAB, H)),
        "emb_ln_g": 1.0 + w(keys[3], (1, H), 0.05),
        "emb_ln_b": w(keys[4], (1, H), 0.05),
        "layers": [],
    }
    for li in range(NLAYERS):
        lk = jax.random.split(keys[5 + li], 16)
        params["layers"].append(dict(
            wq=w(lk[0], (H, H)), bq=w(lk[1], (1, H)),
            wk=w(lk[2], (H, H)), bk=w(lk[3], (1, H)),
            wv=w(lk[4], (H, H)), bv=w(lk[5], (1, H)),
            wo=w(lk[6], (H, H)), bo=w(lk[7], (1, H)),
            g1=1.0 + w(lk[8], (1, H), 0.05), be1=w(lk[9], (1, H), 0.05),
            w1=w(lk[10], (H, FF)), bb1=w(lk[11], (1, FF)),
            w2=w(lk[12], (FF, H)), bb2=w(lk[13], (1, H)),
            g2=1.0 + w(lk[14], (1, H), 0.05), be2=w(lk[15], (1, H), 0.05),
        ))
    return params


def pack_params(params):
    """Pure layout plumbing (one-time, outside the hot path): stack per-layer
    weights with a leading layer axis, convert projections to head-major form
    for the fused kernel, and fold the 1/sqrt(HD) attention scale into Wq/bq."""
    scale = 1.0 / math.sqrt(HD)

    def head_major_cols(wm):   # (H, H) -> (NH, H, HD); head h == wm[:, h*HD:(h+1)*HD]
        return wm.reshape(H, NH, HD).transpose(1, 0, 2)

    def head_bias(bv):         # (1, H) -> (NH, 1, HD)
        return bv.reshape(NH, HD)[:, None, :]

    wqkv, bqkv, wo, w1, bb1, w2, vecs = [], [], [], [], [], [], []
    for lp in params["layers"]:
        wqkv.append(jnp.concatenate([head_major_cols(lp["wq"] * scale),
                                     head_major_cols(lp["wk"]),
                                     head_major_cols(lp["wv"])], axis=0))
        bqkv.append(jnp.concatenate([head_bias(lp["bq"] * scale),
                                     head_bias(lp["bk"]),
                                     head_bias(lp["bv"])], axis=0))
        wo.append(lp["wo"].reshape(NH, HD, H))
        w1.append(lp["w1"])
        bb1.append(lp["bb1"])
        w2.append(lp["w2"])
        vecs.append(jnp.concatenate([lp["bo"], lp["g1"], lp["be1"],
                                     lp["bb2"], lp["g2"], lp["be2"]], axis=0))
    return {
        "word_emb": params["word_emb"],
        "pos_emb": params["pos_emb"],
        "type_emb": params["type_emb"],
        "emb_gb": jnp.concatenate([params["emb_ln_g"], params["emb_ln_b"]], axis=0),
        "wqkv_h": jnp.stack(wqkv),    # (NLAYERS, 3*NH, H, HD)
        "bqkv_h": jnp.stack(bqkv),    # (NLAYERS, 3*NH, 1, HD)
        "wo_h": jnp.stack(wo),        # (NLAYERS, NH, HD, H)
        "w1": jnp.stack(w1),          # (NLAYERS, H, FF)
        "bb1": jnp.stack(bb1),        # (NLAYERS, 1, FF)
        "w2": jnp.stack(w2),          # (NLAYERS, FF, H)
        "vecs": jnp.stack(vecs),      # (NLAYERS, 6, H)
    }


# ----------------------------- forward pass ----------------------------------
@jax.jit
def text_transformer_forward(packed, input_ids, attention_mask):
    """Pallas-backed equivalent of TextTransformer.forward -> last_hidden_state."""
    # Embedding gather is glue; everything else runs inside one fused kernel.
    pos_ids = jnp.arange(S)
    x = (packed["word_emb"][input_ids]
         + packed["pos_emb"][pos_ids][None, :, :]
         + packed["type_emb"][0][None, None, :])
    # Hoisted additive key-padding mask (HF-style extended attention mask).
    mask_add = (1.0 - attention_mask.astype(jnp.float32)).reshape(B, 1, S) * NEG_INF
    return _fused_call(
        x, mask_add, packed["emb_gb"], packed["wqkv_h"], packed["bqkv_h"],
        packed["wo_h"], packed["w1"], packed["bb1"], packed["w2"], packed["vecs"])


# ----------------------------- pure-JAX reference ----------------------------
def text_transformer_reference(params, input_ids, attention_mask):
    pos_ids = jnp.arange(S)
    x = (params["word_emb"][input_ids]
         + params["pos_emb"][pos_ids][None, :, :]
         + params["type_emb"][0][None, None, :])
    x = _layer_norm(x, params["emb_ln_g"][0], params["emb_ln_b"][0])

    mask_add = (1.0 - attention_mask.astype(jnp.float32))[:, None, None, :] * NEG_INF
    scale = 1.0 / math.sqrt(HD)
    for lp in params["layers"]:
        q = x @ lp["wq"] + lp["bq"][0]
        k = x @ lp["wk"] + lp["bk"][0]
        v = x @ lp["wv"] + lp["bv"][0]
        q = q.reshape(B, S, NH, HD).transpose(0, 2, 1, 3)
        k = k.reshape(B, S, NH, HD).transpose(0, 2, 1, 3)
        v = v.reshape(B, S, NH, HD).transpose(0, 2, 1, 3)
        s = jnp.einsum("bhqd,bhkd->bhqk", q, k) * scale + mask_add
        p = jax.nn.softmax(s, axis=-1)
        ctx = jnp.einsum("bhqk,bhkd->bhqd", p, v).transpose(0, 2, 1, 3).reshape(B, S, H)
        attn_out = ctx @ lp["wo"] + lp["bo"][0]
        h1 = _layer_norm(x + attn_out, lp["g1"][0], lp["be1"][0])
        ff = jax.nn.gelu(h1 @ lp["w1"] + lp["bb1"][0], approximate=True)
        ff = ff @ lp["w2"] + lp["bb2"][0]
        x = _layer_norm(h1 + ff, lp["g2"][0], lp["be2"][0])
    return x


# ----------------------------- main ------------------------------------------
if __name__ == "__main__":
    key = jax.random.PRNGKey(0)
    k_param, k_ids = jax.random.split(key)

    params = init_params(k_param)
    packed = pack_params(params)

    input_ids = jax.random.randint(k_ids, (B, S), 0, VOCAB, dtype=jnp.int32)
    # batch 0: all real tokens; batch 1: last 3 positions are padding
    attention_mask = jnp.array(
        [[1, 1, 1, 1, 1, 1, 1, 1],
         [1, 1, 1, 1, 1, 0, 0, 0]], dtype=jnp.int32)

    out = jax.block_until_ready(
        text_transformer_forward(packed, input_ids, attention_mask))

    ref = jax.block_until_ready(
        text_transformer_reference(params, input_ids, attention_mask))

    # Tolerance accounts for the EUP approx reciprocal in the kernel softmax.
    np.testing.assert_allclose(np.asarray(out), np.asarray(ref),
                               atol=5e-3, rtol=5e-3)

    assert out.shape == (B, S, H) and out.dtype == jnp.float32
    print("KERNEL_OK")
</pallas_src>

<mosaic_0001>
module attributes {stable_mosaic.version = 11 : i64} {
  func.func @fused_encoder_kernel(%arg0: i32, %arg1: i32, %arg2: memref<1x8x32xf32, #tpu.memory_space<vmem>>, %arg3: memref<1x1x8xf32, #tpu.memory_space<vmem>>, %arg4: memref<2x32xf32, #tpu.memory_space<vmem>>, %arg5: memref<1x12x32x8xf32, #tpu.memory_space<vmem>>, %arg6: memref<1x12x1x8xf32, #tpu.memory_space<vmem>>, %arg7: memref<1x4x8x32xf32, #tpu.memory_space<vmem>>, %arg8: memref<1x32x64xf32, #tpu.memory_space<vmem>>, %arg9: memref<1x1x64xf32, #tpu.memory_space<vmem>>, %arg10: memref<1x64x32xf32, #tpu.memory_space<vmem>>, %arg11: memref<1x6x32xf32, #tpu.memory_space<vmem>>, %arg12: memref<1x8x32xf32, #tpu.memory_space<vmem>>) attributes {dimension_semantics = [#tpu.dimension_semantics<parallel>, #tpu.dimension_semantics<arbitrary>], iteration_bounds = array<i64: 2, 2>, scalar_prefetch = 0 : i64, scratch_operands = 0 : i64, tpu.core_type = #tpu.core_type<tc>, window_params = [{transform_indices = @transform_0, window_bounds = array<i64: 1, 8, 32>}, {transform_indices = @transform_1, window_bounds = array<i64: 1, 1, 8>}, {pipeline_mode = #tpu.pipeline_mode<synchronous>, transform_indices = @transform_2, window_bounds = array<i64: 2, 32>}, {transform_indices = @transform_3, window_bounds = array<i64: 1, 12, 32, 8>}, {transform_indices = @transform_4, window_bounds = array<i64: 1, 12, 1, 8>}, {transform_indices = @transform_5, window_bounds = array<i64: 1, 4, 8, 32>}, {transform_indices = @transform_6, window_bounds = array<i64: 1, 32, 64>}, {transform_indices = @transform_7, window_bounds = array<i64: 1, 1, 64>}, {transform_indices = @transform_8, window_bounds = array<i64: 1, 64, 32>}, {transform_indices = @transform_9, window_bounds = array<i64: 1, 6, 32>}, {transform_indices = @transform_10, window_bounds = array<i64: 1, 8, 32>}]} {
    %c0_i32 = arith.constant 0 : i32
    %0 = arith.cmpi eq, %arg1, %c0_i32 : i32
    %1 = arith.extui %0 : i1 to i32
    %c0_i32_0 = arith.constant 0 : i32
    %2 = arith.cmpi ne, %1, %c0_i32_0 : i32
    scf.if %2 {
      %c0_55 = arith.constant 0 : index
      %c0_56 = arith.constant 0 : index
      %123 = vector.load %arg4[%c0_55, %c0_56] : memref<2x32xf32, #tpu.memory_space<vmem>>, vector<2x32xf32>
      %c0_57 = arith.constant 0 : index
      %c0_58 = arith.constant 0 : index
      %c0_59 = arith.constant 0 : index
      %124 = vector.load %arg2[%c0_57, %c0_58, %c0_59] : memref<1x8x32xf32, #tpu.memory_space<vmem>>, vector<1x8x32xf32>
      %125 = vector.shape_cast %124 : vector<1x8x32xf32> to vector<8x32xf32>
      %126 = vector.extract_strided_slice %123 {offsets = [0, 0], sizes = [1, 32], strides = [1, 1]} : vector<2x32xf32> to vector<1x32xf32>
      %127 = vector.extract_strided_slice %123 {offsets = [1, 0], sizes = [1, 32], strides = [1, 1]} : vector<2x32xf32> to vector<1x32xf32>
      %cst_60 = arith.constant dense<0.000000e+00> : vector<8xf32>
      %128 = vector.multi_reduction <add>, %125, %cst_60 [1] : vector<8x32xf32> to vector<8xf32>
      %129 = vector.shape_cast %128 : vector<8xf32> to vector<8x1xf32>
      %cst_61 = arith.constant 3.200000e+01 : f32
      %130 = vector.broadcast %cst_61 : f32 to vector<8x1xf32>
      %131 = arith.divf %129, %130 : vector<8x1xf32>
      %132 = vector.broadcast %131 : vector<8x1xf32> to vector<8x32xf32>
      %133 = arith.subf %125, %132 : vector<8x32xf32>
      %134 = arith.mulf %133, %133 : vector<8x32xf32>
      %cst_62 = arith.constant dense<0.000000e+00> : vector<8xf32>
      %135 = vector.multi_reduction <add>, %134, %cst_62 [1] : vector<8x32xf32> to vector<8xf32>
      %136 = vector.shape_cast %135 : vector<8xf32> to vector<8x1xf32>
      %cst_63 = arith.constant 3.200000e+01 : f32
      %137 = vector.broadcast %cst_63 : f32 to vector<8x1xf32>
      %138 = arith.divf %136, %137 : vector<8x1xf32>
      %139 = vector.broadcast %131 : vector<8x1xf32> to vector<8x32xf32>
      %140 = arith.subf %125, %139 : vector<8x32xf32>
      %cst_64 = arith.constant 9.99999996E-13 : f32
      %141 = vector.broadcast %cst_64 : f32 to vector<8x1xf32>
      %142 = arith.addf %138, %141 : vector<8x1xf32>
      %143 = math.rsqrt %142 : vector<8x1xf32>
      %144 = vector.broadcast %143 : vector<8x1xf32> to vector<8x32xf32>
      %145 = arith.mulf %140, %144 : vector<8x32xf32>
      %146 = vector.broadcast %126 : vector<1x32xf32> to vector<8x32xf32>
      %147 = arith.mulf %145, %146 : vector<8x32xf32>
      %148 = vector.broadcast %127 : vector<1x32xf32> to vector<8x32xf32>
      %149 = arith.addf %147, %148 : vector<8x32xf32>
      %c0_65 = arith.constant 0 : index
      %c0_66 = arith.constant 0 : index
      %c0_67 = arith.constant 0 : index
      %150 = vector.load %arg12[%c0_65, %c0_66, %c0_67] : memref<1x8x32xf32, #tpu.memory_space<vmem>>, vector<1x8x32xf32>
      %151 = vector.shape_cast %150 : vector<1x8x32xf32> to vector<8x32xf32>
      %152 = vector.shape_cast %149 : vector<8x32xf32> to vector<1x8x32xf32>
      tpu.vector_store %arg12[%c0_65, %c0_66, %c0_67], %152 {strides = array<i32>} : memref<1x8x32xf32, #tpu.memory_space<vmem>>, vector<1x8x32xf32>,
    } else {
    }
    %c0 = arith.constant 0 : index
    %c0_1 = arith.constant 0 : index
    %c0_2 = arith.constant 0 : index
    %3 = vector.load %arg12[%c0, %c0_1, %c0_2] : memref<1x8x32xf32, #tpu.memory_space<vmem>>, vector<1x8x32xf32>
    %4 = vector.shape_cast %3 : vector<1x8x32xf32> to vector<8x32xf32>
    %c0_3 = arith.constant 0 : index
    %c0_4 = arith.constant 0 : index
    %c0_5 = arith.constant 0 : index
    %5 = vector.load %arg3[%c0_3, %c0_4, %c0_5] : memref<1x1x8xf32, #tpu.memory_space<vmem>>, vector<1x1x8xf32>
    %6 = vector.shape_cast %5 : vector<1x1x8xf32> to vector<1x8xf32>
    %c0_6 = arith.constant 0 : index
    %c0_7 = arith.constant 0 : index
    %c0_8 = arith.constant 0 : index
    %7 = vector.load %arg11[%c0_6, %c0_7, %c0_8] : memref<1x6x32xf32, #tpu.memory_space<vmem>>, vector<1x6x32xf32>
    %8 = vector.shape_cast %7 : vector<1x6x32xf32> to vector<6x32xf32>
    %9 = vector.extract_strided_slice %8 {offsets = [0, 0], sizes = [1, 32], strides = [1, 1]} : vector<6x32xf32> to vector<1x32xf32>
    %10 = vector.extract_strided_slice %8 {offsets = [1, 0], sizes = [1, 32], strides = [1, 1]} : vector<6x32xf32> to vector<1x32xf32>
    %11 = vector.extract_strided_slice %8 {offsets = [2, 0], sizes = [1, 32], strides = [1, 1]} : vector<6x32xf32> to vector<1x32xf32>
    %12 = vector.extract_strided_slice %8 {offsets = [3, 0], sizes = [1, 32], strides = [1, 1]} : vector<6x32xf32> to vector<1x32xf32>
    %13 = vector.extract_strided_slice %8 {offsets = [4, 0], sizes = [1, 32], strides = [1, 1]} : vector<6x32xf32> to vector<1x32xf32>
    %14 = vector.extract_strided_slice %8 {offsets = [5, 0], sizes = [1, 32], strides = [1, 1]} : vector<6x32xf32> to vector<1x32xf32>
    %c0_9 = arith.constant 0 : index
    %c0_10 = arith.constant 0 : index
    %c0_11 = arith.constant 0 : index
    %c0_12 = arith.constant 0 : index
    %15 = vector.load %arg5[%c0_9, %c0_10, %c0_11, %c0_12] : memref<1x12x32x8xf32, #tpu.memory_space<vmem>>, vector<1x12x32x8xf32>
    %16 = vector.shape_cast %15 : vector<1x12x32x8xf32> to vector<12x32x8xf32>
    %c0_13 = arith.constant 0 : index
    %c0_14 = arith.constant 0 : index
    %c0_15 = arith.constant 0 : index
    %c0_16 = arith.constant 0 : index
    %17 = vector.load %arg6[%c0_13, %c0_14, %c0_15, %c0_16] : memref<1x12x1x8xf32, #tpu.memory_space<vmem>>, vector<1x12x1x8xf32>
    %18 = vector.shape_cast %17 : vector<1x12x1x8xf32> to vector<12x1x8xf32>
    %19 = vector.shape_cast %4 : vector<8x32xf32> to vector<1x8x32xf32>
    %20 = vector.shape_cast %19 : vector<1x8x32xf32> to vector<1x8x32xf32>
    %21 = vector.broadcast %20 : vector<1x8x32xf32> to vector<12x8x32xf32>
    "tpu.trace_start"() <{level = 10 : i32, message = "nsh,nhd->nsd"}> : () -> ()
    %cst = arith.constant dense<0.000000e+00> : vector<12x8x8xf32>
    %22 = tpu.matmul %21, %16, %cst {dimension_numbers = #tpu.dot_dimension_numbers<[2], [1], [1], [2], [0, 0, 0, 1, 1, 2], [0], [0]>} : vector<12x8x32xf32>, vector<12x32x8xf32>, vector<12x8x8xf32> -> vector<12x8x8xf32>
    "tpu.trace_stop"() : () -> ()
    %23 = vector.broadcast %18 : vector<12x1x8xf32> to vector<12x8x8xf32>
    %24 = arith.addf %22, %23 : vector<12x8x8xf32>
    %25 = vector.extract_strided_slice %24 {offsets = [0, 0, 0], sizes = [4, 8, 8], strides = [1, 1, 1]} : vector<12x8x8xf32> to vector<4x8x8xf32>
    %26 = vector.extract_strided_slice %24 {offsets = [4, 0, 0], sizes = [4, 8, 8], strides = [1, 1, 1]} : vector<12x8x8xf32> to vector<4x8x8xf32>
    %27 = vector.extract_strided_slice %24 {offsets = [8, 0, 0], sizes = [4, 8, 8], strides = [1, 1, 1]} : vector<12x8x8xf32> to vector<4x8x8xf32>
    "tpu.trace_start"() <{level = 10 : i32, message = "nqd,nkd->nqk"}> : () -> ()
    %cst_17 = arith.constant dense<0.000000e+00> : vector<4x8x8xf32>
    %28 = tpu.matmul %25, %26, %cst_17 {dimension_numbers = #tpu.dot_dimension_numbers<[2], [2], [1], [1], [0, 0, 0, 1, 1, 1], [0], [0]>} : vector<4x8x8xf32>, vector<4x8x8xf32>, vector<4x8x8xf32> -> vector<4x8x8xf32>
    "tpu.trace_stop"() : () -> ()
    %29 = vector.shape_cast %6 : vector<1x8xf32> to vector<1x1x8xf32>
    %30 = vector.broadcast %29 : vector<1x1x8xf32> to vector<4x8x8xf32>
    %31 = arith.addf %28, %30 : vector<4x8x8xf32>
    %cst_18 = arith.constant dense<0xFF800000> : vector<4x8xf32>
    %32 = vector.multi_reduction <maximumf>, %31, %cst_18 [2] : vector<4x8x8xf32> to vector<4x8xf32>
    %33 = vector.shape_cast %32 : vector<4x8xf32> to vector<4x8x1xf32>
    %34 = vector.broadcast %33 : vector<4x8x1xf32> to vector<4x8x8xf32>
    %35 = arith.subf %31, %34 : vector<4x8x8xf32>
    %36 = math.exp %35 : vector<4x8x8xf32>
    %cst_19 = arith.constant dense<0.000000e+00> : vector<4x8xf32>
    %37 = vector.multi_reduction <add>, %36, %cst_19 [2] : vector<4x8x8xf32> to vector<4x8xf32>
    %38 = vector.shape_cast %37 : vector<4x8xf32> to vector<4x8x1xf32>
    %39 = tpu.reciprocal %38 {approx = true} : vector<4x8x1xf32> -> vector<4x8x1xf32>
    %40 = vector.broadcast %39 : vector<4x8x1xf32> to vector<4x8x8xf32>
    %41 = arith.mulf %36, %40 : vector<4x8x8xf32>
    "tpu.trace_start"() <{level = 10 : i32, message = "nqk,nkd->nqd"}> : () -> ()
    %cst_20 = arith.constant dense<0.000000e+00> : vector<4x8x8xf32>
    %42 = tpu.matmul %41, %27, %cst_20 {dimension_numbers = #tpu.dot_dimension_numbers<[2], [1], [1], [2], [0, 0, 0, 1, 1, 2], [0], [0]>} : vector<4x8x8xf32>, vector<4x8x8xf32>, vector<4x8x8xf32> -> vector<4x8x8xf32>
    "tpu.trace_stop"() : () -> ()
    %c0_21 = arith.constant 0 : index
    %c0_22 = arith.constant 0 : index
    %c0_23 = arith.constant 0 : index
    %c0_24 = arith.constant 0 : index
    %43 = vector.load %arg7[%c0_21, %c0_22, %c0_23, %c0_24] : memref<1x4x8x32xf32, #tpu.memory_space<vmem>>, vector<1x4x8x32xf32>
    %44 = vector.shape_cast %43 : vector<1x4x8x32xf32> to vector<4x8x32xf32>
    "tpu.trace_start"() <{level = 10 : i32, message = "nsd,ndh->nsh"}> : () -> ()
    %cst_25 = arith.constant dense<0.000000e+00> : vector<4x8x32xf32>
    %45 = tpu.matmul %42, %44, %cst_25 {dimension_numbers = #tpu.dot_dimension_numbers<[2], [1], [1], [2], [0, 0, 0, 1, 1, 2], [0], [0]>} : vector<4x8x8xf32>, vector<4x8x32xf32>, vector<4x8x32xf32> -> vector<4x8x32xf32>
    "tpu.trace_stop"() : () -> ()
    %cst_26 = arith.constant dense<0.000000e+00> : vector<8x32xf32>
    %46 = vector.multi_reduction <add>, %45, %cst_26 [0] : vector<4x8x32xf32> to vector<8x32xf32>
    %47 = vector.broadcast %9 : vector<1x32xf32> to vector<8x32xf32>
    %48 = arith.addf %46, %47 : vector<8x32xf32>
    %49 = arith.addf %4, %48 : vector<8x32xf32>
    %cst_27 = arith.constant dense<0.000000e+00> : vector<8xf32>
    %50 = vector.multi_reduction <add>, %49, %cst_27 [1] : vector<8x32xf32> to vector<8xf32>
    %51 = vector.shape_cast %50 : vector<8xf32> to vector<8x1xf32>
    %cst_28 = arith.constant 3.200000e+01 : f32
    %52 = vector.broadcast %cst_28 : f32 to vector<8x1xf32>
    %53 = arith.divf %51, %52 : vector<8x1xf32>
    %54 = vector.broadcast %53 : vector<8x1xf32> to vector<8x32xf32>
    %55 = arith.subf %49, %54 : vector<8x32xf32>
    %56 = arith.mulf %55, %55 : vector<8x32xf32>
    %cst_29 = arith.constant dense<0.000000e+00> : vector<8xf32>
    %57 = vector.multi_reduction <add>, %56, %cst_29 [1] : vector<8x32xf32> to vector<8xf32>
    %58 = vector.shape_cast %57 : vector<8xf32> to vector<8x1xf32>
    %cst_30 = arith.constant 3.200000e+01 : f32
    %59 = vector.broadcast %cst_30 : f32 to vector<8x1xf32>
    %60 = arith.divf %58, %59 : vector<8x1xf32>
    %61 = vector.broadcast %53 : vector<8x1xf32> to vector<8x32xf32>
    %62 = arith.subf %49, %61 : vector<8x32xf32>
    %cst_31 = arith.constant 9.99999996E-13 : f32
    %63 = vector.broadcast %cst_31 : f32 to vector<8x1xf32>
    %64 = arith.addf %60, %63 : vector<8x1xf32>
    %65 = math.rsqrt %64 : vector<8x1xf32>
    %66 = vector.broadcast %65 : vector<8x1xf32> to vector<8x32xf32>
    %67 = arith.mulf %62, %66 : vector<8x32xf32>
    %68 = vector.broadcast %10 : vector<1x32xf32> to vector<8x32xf32>
    %69 = arith.mulf %67, %68 : vector<8x32xf32>
    %70 = vector.broadcast %11 : vector<1x32xf32> to vector<8x32xf32>
    %71 = arith.addf %69, %70 : vector<8x32xf32>
    %c0_32 = arith.constant 0 : index
    %c0_33 = arith.constant 0 : index
    %c0_34 = arith.constant 0 : index
    %72 = vector.load %arg8[%c0_32, %c0_33, %c0_34] : memref<1x32x64xf32, #tpu.memory_space<vmem>>, vector<1x32x64xf32>
    %73 = vector.shape_cast %72 : vector<1x32x64xf32> to vector<32x64xf32>
    %cst_35 = arith.constant dense<0.000000e+00> : vector<8x64xf32>
    %74 = tpu.matmul %71, %73, %cst_35 {dimension_numbers = #tpu.dot_dimension_numbers<[1], [0], [0], [1], [0, 0, 1, 1], [], []>} : vector<8x32xf32>, vector<32x64xf32>, vector<8x64xf32> -> vector<8x64xf32>
    %c0_36 = arith.constant 0 : index
    %c0_37 = arith.constant 0 : index
    %c0_38 = arith.constant 0 : index
    %75 = vector.load %arg9[%c0_36, %c0_37, %c0_38] : memref<1x1x64xf32, #tpu.memory_space<vmem>>, vector<1x1x64xf32>
    %76 = vector.shape_cast %75 : vector<1x1x64xf32> to vector<1x64xf32>
    %77 = vector.broadcast %76 : vector<1x64xf32> to vector<8x64xf32>
    %78 = arith.addf %74, %77 : vector<8x64xf32>
    %79 = arith.mulf %78, %78 : vector<8x64xf32>
    %80 = arith.mulf %78, %79 : vector<8x64xf32>
    %cst_39 = arith.constant 4.471500e-02 : f32
    %81 = vector.broadcast %cst_39 : f32 to vector<8x64xf32>
    %82 = arith.mulf %81, %80 : vector<8x64xf32>
    %83 = arith.addf %78, %82 : vector<8x64xf32>
    %cst_40 = arith.constant 0.797884583 : f32
    %84 = vector.broadcast %cst_40 : f32 to vector<8x64xf32>
    %85 = arith.mulf %84, %83 : vector<8x64xf32>
    %86 = math.tanh %85 : vector<8x64xf32>
    %cst_41 = arith.constant 1.000000e+00 : f32
    %87 = vector.broadcast %cst_41 : f32 to vector<8x64xf32>
    %88 = arith.addf %87, %86 : vector<8x64xf32>
    %cst_42 = arith.constant 5.000000e-01 : f32
    %89 = vector.broadcast %cst_42 : f32 to vector<8x64xf32>
    %90 = arith.mulf %89, %88 : vector<8x64xf32>
    %91 = arith.mulf %78, %90 : vector<8x64xf32>
    %c0_43 = arith.constant 0 : index
    %c0_44 = arith.constant 0 : index
    %c0_45 = arith.constant 0 : index
    %92 = vector.load %arg10[%c0_43, %c0_44, %c0_45] : memref<1x64x32xf32, #tpu.memory_space<vmem>>, vector<1x64x32xf32>
    %93 = vector.shape_cast %92 : vector<1x64x32xf32> to vector<64x32xf32>
    %cst_46 = arith.constant dense<0.000000e+00> : vector<8x32xf32>
    %94 = tpu.matmul %91, %93, %cst_46 {dimension_numbers = #tpu.dot_dimension_numbers<[1], [0], [0], [1], [0, 0, 1, 1], [], []>} : vector<8x64xf32>, vector<64x32xf32>, vector<8x32xf32> -> vector<8x32xf32>
    %95 = vector.broadcast %12 : vector<1x32xf32> to vector<8x32xf32>
    %96 = arith.addf %94, %95 : vector<8x32xf32>
    %97 = arith.addf %71, %96 : vector<8x32xf32>
    %cst_47 = arith.constant dense<0.000000e+00> : vector<8xf32>
    %98 = vector.multi_reduction <add>, %97, %cst_47 [1] : vector<8x32xf32> to vector<8xf32>
    %99 = vector.shape_cast %98 : vector<8xf32> to vector<8x1xf32>
    %cst_48 = arith.constant 3.200000e+01 : f32
    %100 = vector.broadcast %cst_48 : f32 to vector<8x1xf32>
    %101 = arith.divf %99, %100 : vector<8x1xf32>
    %102 = vector.broadcast %101 : vector<8x1xf32> to vector<8x32xf32>
    %103 = arith.subf %97, %102 : vector<8x32xf32>
    %104 = arith.mulf %103, %103 : vector<8x32xf32>
    %cst_49 = arith.constant dense<0.000000e+00> : vector<8xf32>
    %105 = vector.multi_reduction <add>, %104, %cst_49 [1] : vector<8x32xf32> to vector<8xf32>
    %106 = vector.shape_cast %105 : vector<8xf32> to vector<8x1xf32>
    %cst_50 = arith.constant 3.200000e+01 : f32
    %107 = vector.broadcast %cst_50 : f32 to vector<8x1xf32>
    %108 = arith.divf %106, %107 : vector<8x1xf32>
    %109 = vector.broadcast %101 : vector<8x1xf32> to vector<8x32xf32>
    %110 = arith.subf %97, %109 : vector<8x32xf32>
    %cst_51 = arith.constant 9.99999996E-13 : f32
    %111 = vector.broadcast %cst_51 : f32 to vector<8x1xf32>
    %112 = arith.addf %108, %111 : vector<8x1xf32>
    %113 = math.rsqrt %112 : vector<8x1xf32>
    %114 = vector.broadcast %113 : vector<8x1xf32> to vector<8x32xf32>
    %115 = arith.mulf %110, %114 : vector<8x32xf32>
    %116 = vector.broadcast %13 : vector<1x32xf32> to vector<8x32xf32>
    %117 = arith.mulf %115, %116 : vector<8x32xf32>
    %118 = vector.broadcast %14 : vector<1x32xf32> to vector<8x32xf32>
    %119 = arith.addf %117, %118 : vector<8x32xf32>
    %c0_52 = arith.constant 0 : index
    %c0_53 = arith.constant 0 : index
    %c0_54 = arith.constant 0 : index
    %120 = vector.load %arg12[%c0_52, %c0_53, %c0_54] : memref<1x8x32xf32, #tpu.memory_space<vmem>>, vector<1x8x32xf32>
    %121 = vector.shape_cast %120 : vector<1x8x32xf32> to vector<8x32xf32>
    %122 = vector.shape_cast %119 : vector<8x32xf32> to vector<1x8x32xf32>
    tpu.vector_store %arg12[%c0_52, %c0_53, %c0_54], %122 {strides = array<i32>} : memref<1x8x32xf32, #tpu.memory_space<vmem>>, vector<1x8x32xf32>,
    return
  }
  func.func @transform_0(%arg0: i32, %arg1: i32) -> (i32, i32, i32) {
    %c0_i32 = arith.constant 0 : i32
    %c0_i32_0 = arith.constant 0 : i32
    %c0_i32_1 = arith.constant 0 : i32
    return %arg0, %c0_i32, %c0_i32_0 : i32, i32, i32
  }
  func.func @transform_1(%arg0: i32, %arg1: i32) -> (i32, i32, i32) {
    %c0_i32 = arith.constant 0 : i32
    %c0_i32_0 = arith.constant 0 : i32
    %c0_i32_1 = arith.constant 0 : i32
    return %arg0, %c0_i32, %c0_i32_0 : i32, i32, i32
  }
  func.func @transform_2(%arg0: i32, %arg1: i32) -> (i32, i32) {
    %c0_i32 = arith.constant 0 : i32
    %c0_i32_0 = arith.constant 0 : i32
    %c0_i32_1 = arith.constant 0 : i32
    return %c0_i32, %c0_i32_0 : i32, i32
  }
  func.func @transform_3(%arg0: i32, %arg1: i32) -> (i32, i32, i32, i32) {
    %c0_i32 = arith.constant 0 : i32
    %c0_i32_0 = arith.constant 0 : i32
    %c0_i32_1 = arith.constant 0 : i32
    %c0_i32_2 = arith.constant 0 : i32
    return %arg1, %c0_i32, %c0_i32_0, %c0_i32_1 : i32, i32, i32, i32
  }
  func.func @transform_4(%arg0: i32, %arg1: i32) -> (i32, i32, i32, i32) {
    %c0_i32 = arith.constant 0 : i32
    %c0_i32_0 = arith.constant 0 : i32
    %c0_i32_1 = arith.constant 0 : i32
    %c0_i32_2 = arith.constant 0 : i32
    return %arg1, %c0_i32, %c0_i32_0, %c0_i32_1 : i32, i32, i32, i32
  }
  func.func @transform_5(%arg0: i32, %arg1: i32) -> (i32, i32, i32, i32) {
    %c0_i32 = arith.constant 0 : i32
    %c0_i32_0 = arith.constant 0 : i32
    %c0_i32_1 = arith.constant 0 : i32
    %c0_i32_2 = arith.constant 0 : i32
    return %arg1, %c0_i32, %c0_i32_0, %c0_i32_1 : i32, i32, i32, i32
  }
  func.func @transform_6(%arg0: i32, %arg1: i32) -> (i32, i32, i32) {
    %c0_i32 = arith.constant 0 : i32
    %c0_i32_0 = arith.constant 0 : i32
    %c0_i32_1 = arith.constant 0 : i32
    return %arg1, %c0_i32, %c0_i32_0 : i32, i32, i32
  }
  func.func @transform_7(%arg0: i32, %arg1: i32) -> (i32, i32, i32) {
    %c0_i32 = arith.constant 0 : i32
    %c0_i32_0 = arith.constant 0 : i32
    %c0_i32_1 = arith.constant 0 : i32
    return %arg1, %c0_i32, %c0_i32_0 : i32, i32, i32
  }
  func.func @transform_8(%arg0: i32, %arg1: i32) -> (i32, i32, i32) {
    %c0_i32 = arith.constant 0 : i32
    %c0_i32_0 = arith.constant 0 : i32
    %c0_i32_1 = arith.constant 0 : i32
    return %arg1, %c0_i32, %c0_i32_0 : i32, i32, i32
  }
  func.func @transform_9(%arg0: i32, %arg1: i32) -> (i32, i32, i32) {
    %c0_i32 = arith.constant 0 : i32
    %c0_i32_0 = arith.constant 0 : i32
    %c0_i32_1 = arith.constant 0 : i32
    return %arg1, %c0_i32, %c0_i32_0 : i32, i32, i32
  }
  func.func @transform_10(%arg0: i32, %arg1: i32) -> (i32, i32, i32) {
    %c0_i32 = arith.constant 0 : i32
    %c0_i32_0 = arith.constant 0 : i32
    %c0_i32_1 = arith.constant 0 : i32
    return %arg0, %c0_i32, %c0_i32_0 : i32, i32, i32
  }
}

</mosaic_0001>

<bundles_post_ra>
// kernel: text_transformer_forward.1
= control target key start
LH: loop header
LB: loop body
LE: loop exit
PB: predicated region body
PF: predicated region fallthrough
CT: control target
= control target key end

     0   :  { %s3996_s0 = inlined_call_operand.vmem [shape: f32[2,8,32], index: 0, kind: input, shape index: {}]   ;;  %s3997_s1 = inlined_call_operand.vmem [shape: f32[2,1,8], index: 1, kind: input, shape index: {}]   ;;  %s3998_s2 = inlined_call_operand.vmem [shape: f32[2,32], index: 2, kind: input, shape index: {}]   ;;  %s3999_s3 = inlined_call_operand.vmem [shape: f32[2,12,32,8], index: 3, kind: input, shape index: {}]   ;;  %s4000_s4 = inlined_call_operand.vmem [shape: f32[2,12,1,8], index: 4, kind: input, shape index: {}]   ;;  %s4001_s5 = inlined_call_operand.vmem [shape: f32[2,4,8,32], index: 5, kind: input, shape index: {}]   ;;  %s4002_s6 = inlined_call_operand.vmem [shape: f32[2,32,64], index: 6, kind: input, shape index: {}]   ;;  %s4003_s7 = inlined_call_operand.vmem [shape: f32[2,1,64], index: 7, kind: input, shape index: {}]   ;;  %s4004_s8 = inlined_call_operand.vmem [shape: f32[2,64,32], index: 8, kind: input, shape index: {}]   ;;  %s4005_s9 = inlined_call_operand.vmem [shape: f32[2,6,32], index: 9, kind: input, shape index: {}]   ;;  %s4006_s10 = inlined_call_operand.hbm [shape: f32[2,8,32], index: 10, kind: output, shape index: {}]  }
   0x1   :  { %4021 = sst [smem:[#allocation17_spill]] %s3996_s0 }
   0x2   :  { %4022 = sst [smem:[#allocation18_spill]] %s3999_s3 }
   0x3   :  { %4023 = sst [smem:[#allocation19_spill]] %s4001_s5 }
   0x4   :  { %4024 = sst [smem:[#allocation20_spill]] %s4006_s10 }
   0x5   :  { %15 = vsyncpa [#allocation3], 0 }
   0x6   :  { %17 = vsyncpa [#allocation3 + $0x1], 0  ;;  %s3516_s13 = smov 0   ;;  %s3518_s14 = smov 0  }
   0x7   :  { %s3520_s15 = smov 0   ;;  %s3522_s16 = smov 0  }
   0x8   :  { %s3524_s17 = smov 0   ;;  %s3526_s18 = smov 0  }
   0x9   :  { %s3528_s19 = smov 0   ;;  %s3530_s20 = smov 0  }
   0xa LB: > { %4025 = sst [smem:[#allocation5_spill]] %s3428_s13  ;;  %s2878_s21 = sadd.s32 4294967295, %s3456_s20   ;;  %s3456_s20 = sphi %s3530_s20, %s23_s20   ;;  %s3452_s19 = sphi %s3528_s19, %s4057_s19   ;;  %s3448_s18 = sphi %s3526_s18, %s4056_s18   ;;  %s3444_s17 = sphi %s3524_s17, %s4055_s17   ;;  %s3440_s16 = sphi %s3522_s16, %s4054_s16   ;;  %s3436_s15 = sphi %s3520_s15, %s4053_s15   ;;  %s3432_s14 = sphi %s3518_s14, %s4052_s14   ;;  %s3428_s13 = sphi %s3516_s13, %s4051_s13  }
   0xb   : > { %4026 = sst [smem:[#allocation6_spill]] %s3432_s14  ;;  %s2879_s22 = sadd.s32 4294967294, %s3456_s20  }
   0xc   : > { %4027 = sst [smem:[#allocation7_spill]] %s3436_s15  ;;  %s32_s23 = sadd.s32 1, %s3448_s18 }
   0xd   : > { %4028 = sst [smem:[#allocation8_spill]] %s3444_s17  ;;  %p33_p0 = scmp.ge.s32.totalorder %s32_s23, 2 }
   0xe   : > { %4029 = sst [smem:[#allocation9_spill]] %s3448_s18  ;;  %s35_s24 = sadd.s32 1, %s3452_s19 }
   0xf   : > { %4030 = sst [smem:[#allocation10_spill]] %s3452_s19  ;;  %p307_p1 = scmp.ne.s32.totalorder %s3436_s15, %s3432_s14 }
  0x10   : > { %4031 = sst [smem:[#allocation11_spill]] %s3456_s20  ;;  %p308_p2 = scmp.eq.s32.totalorder %s2878_s21, 3 }
  0x11   : > { %s4059_s23 = smov (%p33_p0, %s32_s23), 0  ;;  %s4061_s24 = smov (!%p33_p0, %s35_s24), %s3452_s19 }
  0x12   : > { %4032 = sst [smem:[#allocation12_spill]] %s4059_s23  ;;  %p3565_p3 = por %p308_p2, %p307_p1 }
  0x13   : > { %p313_p4 = scmp.ne.s32.totalorder %s3432_s14, %s3428_s13  ;;  %p37_p5 = scmp.ge.s32.totalorder %s4061_s24, 2 }
  0x14   : > { %s4033_s25 = scalar_select %p3565_p3, 1, 0 }
  0x15   : > { %p314_p6 = scmp.eq.s32.totalorder %s2879_s22, 3  ;;  %p2882_p7 = scmp.ge.s32.totalorder %s3456_s20, 1 }
  0x16   : > { %4034 = sst [smem:[#allocation13_spill]] %s4033_s25  ;;  %p400_p8 = scmp.lt.s32.totalorder %s3456_s20, 5 }
  0x17   : > { %s4063_s24 = smov (%p37_p5, %s4061_s24), 0  ;;  %p3575_p9 = por %p314_p6, %p313_p4 }
  0x18   : > { %4035 = sst [smem:[#allocation14_spill]] %s4063_s24  ;;  %p401_p10 = pnand %p2882_p7, %p400_p8 }
  0x19   : > { %s4036_s26 = scalar_select %p3575_p9, 1, 0 }
  0x1a   : > { %s294_s27 = ssub.s32 %s3452_s19, %s4063_s24  ;;  %s297_s28 = sadd.s32 1, %s3436_s15 }
  0x1b   : > { %4037 = sst [smem:[#allocation15_spill]] %s4036_s26  ;;  %p295_p11 = scmp.eq.s32.totalorder %s294_s27, 0 }
  0x1c   : > { %404 = sbr.rel (%p401_p10) target bundleno = 2551 (0x9f7), region = 60  ;;  %s4008_s30 = sand.u32 (!%p401_p10), 1, %s3432_s14  }
  0x1d   : > { %s3583_s29 = scalar_select %p295_p11, %s3436_s15, %s297_s28  }
  0x1e   : > { %p471_p12 = scmp.lt.s32.totalorder (!%p401_p10), %s3444_s17, 1  ;;  %s2883_s11 = sshll.u32 (!%p401_p10), %s4008_s30, 3 }
  0x1f   : > { %4038 = sst [smem:[#allocation16_spill]] %s3583_s29  ;;  %p478_p13 = scmp.lt.s32.totalorder (!%p401_p10), %s3440_s16, 1 }
  0x20   : > { %s4039_s0 = sld [smem:[#allocation17_spill]] (!%p401_p10)  ;;  %s3643_s27 = scalar_lea.vmem (!%p401_p10), [#allocation2], %s2883_s11 }
  0x21   : > { %s3591_s12 = scalar_select %p471_p12, %s3444_s17, 1 }
  0x22   : > { %s3594_s21 = scalar_select %p478_p13, %s3440_s16, 1 }
  0x23   : > { %s2884_s22 = sshll.u32 %s3591_s12, 3  ;;  %s4040_s3 = sld [smem:[#allocation18_spill]] }
  0x24   : > { %s3265_s18 = smul.u32 384, %s3594_s21  ;;  %s2942_s15 = sshll.u32 %s3594_s21, 5 }
  0x25   : > { %s3266_s29 = smul.u32 12, %s3594_s21  ;;  %s4041_s5 = sld [smem:[#allocation19_spill]] }
  0x26   : > { %s474_s19 = scalar_lea.vmem %s4039_s0, %s2884_s22  ;;  %s3625_s22 = scalar_lea.vmem %s4002_s6, %s2942_s15 }
  0x27   : > { %s3620_s28 = scalar_lea.vmem %s4000_s4, %s3266_s29  ;;  %s499_s13 = scalar_lea.vmem %s4003_s7, %s3594_s21 }
  0x28   : > { %s2892_s25 = sshll.u32 %s3594_s21, 3  ;;  %p2893_p0 = scmp.ne.s32.totalorder %s3440_s16, 0 }
  0x29   : > { %s3610_s20 = scalar_lea.vmem %s4040_s3, %s3265_s18  ;;  %s2944_s18 = sshll.u32 %s3594_s21, 6 }
  0x2a   : > { %s3635_s10 = scalar_lea.vmem %s4004_s8, %s2944_s18  ;;  %s3641_s29 = scalar_lea.vmem %s4005_s9, %s2892_s25 }
  0x2b   : > { %s3615_s14 = scalar_lea.vmem %s4041_s5, %s2942_s15  ;;  %512 = sbr.rel (%p2893_p0) target bundleno = 358 (0x166), region = 64 }
  0x30   : > { %v514_v0 = vld [vmem:[%s474_s19] sm:$0xff]  ;;  %vm515_vm0 = vcmask 261120   ;;  %v530_v10 = vlaneseq }
  0x31   : > { %v516_v1 = vsel %vm515_vm0, %v514_v0, 0.0  ;;  %v513_v13 = vld [vmem:[%s3998_s2] sm:$0x3] }
  0x32   : > { %517 = vadd.xlane.f32.xlu0 %v516_v1  ;;  %v531_v11 = vshrl.u32 %v530_v10, 7 }
  0x34   : > { %v532_v12 = vsub.s32 0, %v531_v11  ;;  %v537_v14 = vsub.s32 1, %v531_v11 }
  0x36   : > { %v533_v15 = vrot.slane %v513_v13, %v532_v12  ;;  %v538_v18 = vrot.slane %v513_v13, %v537_v14 }
  0xbb   : > { %v518_v2 = vpop.xlane.xlu0 %517 }
  0xbc   : > { %v520_v3 = vmul.f32 0.03125, %v518_v2 }
  0xbe   : > { %v521_v4 = vsub.f32 %v514_v0, %v520_v3 }
  0xc0   : > { %v522_v5 = vmul.f32 %v521_v4, %v521_v4 }
  0xc2   : > { %v523_v6 = vsel %vm515_vm0, %v522_v5, 0.0 }
  0xc3   : > { %524 = vadd.xlane.f32.xlu0 %v523_v6 }
 0x14c   : > { %v525_v7 = vpop.xlane.xlu0 %524 }
 0x14d   : > { %v526_v8 = vmul.f32 0.03125, %v525_v7 }
 0x14f   : > { %v527_v9 = vadd.f32 1e-12, %v526_v8 }
 0x151   : > { %3340 = vrsqrt.f32 %v527_v9 }
 0x15e   : > { %v3341_v16 = vpop.eup %3340 }
 0x15f   : > { %v529_v17 = vmul.f32 %v3341_v16, %v521_v4 }
 0x161   : > { %v534_v19 = vmul.f32 %v533_v15, %v529_v17 }
 0x163   : > { %v539_v20 = vadd.f32 %v538_v18, %v534_v19 }
 0x165   : > { %540 = vst.msk [vmem:[%s3643_s27] sm:$0xff] %vm515_vm0, %v539_v20 }
 0x166 PF: > { %v547_v21 = vld [vmem:[%s3610_s20 + $0x18] sm:$0xff]  ;;  %v3458_v23 = vmov 0.0   ;;  %v546_v24 = vld [vmem:[%s3610_s20 + $0x10] sm:$0xff]  ;;  %v545_v26 = vld [vmem:[%s3610_s20 + $0x8] sm:$0xff]  ;;  %vm676_vm1 = vcmask 261120   ;;  %vm3459_vm2 = vmmov 0   ;;  %s4042_s16 = scalar_lea.vmem %s3997_s1, %s3591_s12 }
 0x167   : > { %v551_v22 = vld [vmem:[%s3610_s20 + $0x38] sm:$0xff]  ;;  %3043 = vmatprep.subr.mxu0 %v3458_v23  ;;  %3054 = vmatprep.subr.mxu1 %v3458_v23  ;;  %v550_v25 = vld [vmem:[%s3610_s20 + $0x30] sm:$0xff]  ;;  %v549_v27 = vld [vmem:[%s3610_s20 + $0x28] sm:$0xff]  ;;  %vm1526_vm3 = vcmask 64512   ;;  %vm2605_vm4 = vcmask 523264   ;;  %s4044_s24 = sld [smem:[#allocation6_spill]] }
 0x168   : > { %3044 = vmatpush3.msra.mxu0 %v547_v21  ;;  %3055 = vmatpush3.msra.mxu1 %v551_v22  ;;  %v544_v28 = vld [vmem:[%s3610_s20] sm:$0xff]  ;;  %v555_v31 = vld [vmem:[%s3610_s20 + $0x58] sm:$0xff]  ;;  %v554_v33 = vld [vmem:[%s3610_s20 + $0x50] sm:$0xff]  ;;  %s2718_s21 = sshll.u32 %s3643_s27, 4  ;;  %s4046_s30 = sld [smem:[#allocation20_spill]]  ;;  %s2719_s21 = int_to_ptr.vmem [resolvable:$true] %s2718_s21 }
 0x169   : > { %3045 = vmatprep.subr.mxu0 %v3458_v23  ;;  %3056 = vmatprep.subr.mxu1 %v3458_v23  ;;  %v548_v29 = vld [vmem:[%s3610_s20 + $0x20] sm:$0xff]  ;;  %v559_v32 = vld [vmem:[%s3610_s20 + $0x78] sm:$0xff]  ;;  %v558_v34 = vld [vmem:[%s3610_s20 + $0x70] sm:$0xff]  ;;  %s3364_s26 = scalar_lea.vmem %s2719_s21, 128 }
 0x16a   : > { %3046 = vmatpush3.msra.mxu0 %v546_v24  ;;  %3057 = vmatpush3.msra.mxu1 %v550_v25  ;;  %v553_v35 = vld [vmem:[%s3610_s20 + $0x48] sm:$0xff]  ;;  %v552_v37 = vld [vmem:[%s3610_s20 + $0x40] sm:$0xff]  ;;  %v563_v39 = vld [vmem:[%s3610_s20 + $0x98] sm:$0xff]  ;;  %p3365_p1 = scmp.ne.s32.totalorder %s2719_s21, %s3364_s26 }
 0x16b   : > { %3047 = vmatprep.subr.mxu0 %v3458_v23  ;;  %3058 = vmatprep.subr.mxu1 %v3458_v23  ;;  %v557_v36 = vld [vmem:[%s3610_s20 + $0x68] sm:$0xff]  ;;  %v556_v38 = vld [vmem:[%s3610_s20 + $0x60] sm:$0xff]  ;;  %v567_v40 = vld [vmem:[%s3610_s20 + $0xb8] sm:$0xff] }
 0x16c   : > { %3048 = vmatpush3.msra.mxu0 %v545_v26  ;;  %3059 = vmatpush3.msra.mxu1 %v549_v27  ;;  %v3668_v30 = vld [vmem:[%s3643_s27] sm:$0xff]  ;;  %v562_v41 = vld [vmem:[%s3610_s20 + $0x90] sm:$0xff]  ;;  %v571_v47 = vld [vmem:[%s3610_s20 + $0xd8] sm:$0xff]  ;;  %p3366_p2 = pnand %p3365_p1, %p3565_p3 }
 0x16d   : > { %3049 = vmatprep.subr.mxu0 %v3458_v23  ;;  %3060 = vmatprep.subr.mxu1 %v3458_v23  ;;  %v566_v42 = vld [vmem:[%s3610_s20 + $0xb0] sm:$0xff]  ;;  %v561_v43 = vld [vmem:[%s3610_s20 + $0x88] sm:$0xff]  ;;  %v560_v45 = vld [vmem:[%s3610_s20 + $0x80] sm:$0xff] }
 0x16e   : > { %3050 = vmatpush3.msra.mxu0 %v544_v28  ;;  %3051 = vmatprep.mubr.msk.f32.mxu0 %vm3459_vm2, %v3458_v23  ;;  %v565_v44 = vld [vmem:[%s3610_s20 + $0xa8] sm:$0xff]  ;;  %v564_v46 = vld [vmem:[%s3610_s20 + $0xa0] sm:$0xff]  ;;  %v575_v48 = vld [vmem:[%s3610_s20 + $0xf8] sm:$0xff]  ;;  %p3367_p4 = pneg %p3366_p2 }
 0x16f   : > { %3061 = vmatpush3.msra.mxu1 %v548_v29  ;;  %3052 = vmatmul.mubr.msk.f32.vlgmr.msra.gmra.mxu0 %vm676_vm1, %v3668_v30  ;;  %v570_v49 = vld [vmem:[%s3610_s20 + $0xd0] sm:$0xff]  ;;  %v569_v51 = vld [vmem:[%s3610_s20 + $0xc8] sm:$0xff]  ;;  %v568_v53 = vld [vmem:[%s3610_s20 + $0xc0] sm:$0xff] }
 0x170   : > { %3062 = vmatprep.mubr.msk.f32.mxu1 %vm3459_vm2, %v3458_v23  ;;  %3065 = vmatprep.subr.mxu0 %v3458_v23  ;;  %v574_v50 = vld [vmem:[%s3610_s20 + $0xf0] sm:$0xff]  ;;  %v573_v52 = vld [vmem:[%s3610_s20 + $0xe8] sm:$0xff]  ;;  %v572_v54 = vld [vmem:[%s3610_s20 + $0xe0] sm:$0xff] }
 0x171   : > { %3076 = vmatprep.subr.mxu1 %v3458_v23  ;;  %3063 = vmatmul.mubr.msk.f32.vlgmr.msra.gmra.mxu1 %vm676_vm1, %v3668_v30  ;;  %v579_v55 = vld [vmem:[%s3610_s20 + $0x118] sm:$0xff]  ;;  %v578_v56 = vld [vmem:[%s3610_s20 + $0x110] sm:$0xff]  ;;  %v577_v57 = vld [vmem:[%s3610_s20 + $0x108] sm:$0xff] }
 0x172   : > { %3066 = vmatpush3.msra.mxu0 %v555_v31  ;;  %3077 = vmatpush3.msra.mxu1 %v559_v32  ;;  %v576_v58 = vld [vmem:[%s3610_s20 + $0x100] sm:$0xff]  ;;  %v587_v59 = vld [vmem:[%s3610_s20 + $0x158] sm:$0xff]  ;;  %v586_v61 = vld [vmem:[%s3610_s20 + $0x150] sm:$0xff] }
 0x173   : > { %3067 = vmatprep.subr.mxu0 %v3458_v23  ;;  %3078 = vmatprep.subr.mxu1 %v3458_v23  ;;  %v583_v60 = vld [vmem:[%s3610_s20 + $0x138] sm:$0xff]  ;;  %v582_v62 = vld [vmem:[%s3610_s20 + $0x130] sm:$0xff]  ;;  %v585_v63 = vld [vmem:[%s3610_s20 + $0x148] sm:$0xff] }
 0x174   : > { %3068 = vmatpush3.msra.mxu0 %v554_v33  ;;  %3079 = vmatpush3.msra.mxu1 %v558_v34  ;;  %v581_v0 = vld [vmem:[%s3610_s20 + $0x128] sm:$0xff]  ;;  %v584_v1 = vld [vmem:[%s3610_s20 + $0x140] sm:$0xff]  ;;  %v591_v3 = vld [vmem:[%s3610_s20 + $0x178] sm:$0xff] }
 0x175   : > { %3069 = vmatprep.subr.mxu0 %v3458_v23  ;;  %3080 = vmatprep.subr.mxu1 %v3458_v23  ;;  %v580_v2 = vld [vmem:[%s3610_s20 + $0x120] sm:$0xff]  ;;  %v590_v4 = vld [vmem:[%s3610_s20 + $0x170] sm:$0xff]  ;;  %v589_v5 = vld [vmem:[%s3610_s20 + $0x168] sm:$0xff] }
 0x176   : > { %3070 = vmatpush3.msra.mxu0 %v553_v35  ;;  %3081 = vmatpush3.msra.mxu1 %v557_v36  ;;  %v588_v6 = vld [vmem:[%s3610_s20 + $0x160] sm:$0xff]  ;;  %s4043_s20 = sld [smem:[#allocation8_spill]] }
 0x177   : > { %3071 = vmatprep.subr.mxu0 %v3458_v23  ;;  %3082 = vmatprep.subr.mxu1 %v3458_v23  ;;  %v2898_v15 = vld [vmem:[%s3620_s28 + $0x4] ss:$0 sm:$0xff]  ;;  %v2899_v17 = vld [vmem:[%s3620_s28 + $0x5] ss:$0 sm:$0xff]  ;;  %v2894_v18 = vld [vmem:[%s3620_s28] ss:$0 sm:$0xff] }
 0x178   : > { %3072 = vmatpush3.msra.mxu0 %v552_v37  ;;  %3073 = vmatprep.mubr.msk.f32.mxu0 %vm3459_vm2, %v3458_v23  ;;  %v2895_v26 = vld [vmem:[%s3620_s28 + $0x1] ss:$0 sm:$0xff]  ;;  %v2900_v28 = vld [vmem:[%s3620_s28 + $0x6] ss:$0 sm:$0xff]  ;;  %v2901_v29 = vld [vmem:[%s3620_s28 + $0x7] ss:$0 sm:$0xff] }
 0x179   : > { %3083 = vmatpush3.msra.mxu1 %v556_v38  ;;  %3074 = vmatmul.mubr.msk.f32.vlgmr.msra.gmra.mxu0 %vm676_vm1, %v3668_v30  ;;  %v2896_v33 = vld [vmem:[%s3620_s28 + $0x2] ss:$0 sm:$0xff]  ;;  %v2897_v34 = vld [vmem:[%s3620_s28 + $0x3] ss:$0 sm:$0xff] }
 0x17a   : > { %3084 = vmatprep.mubr.msk.f32.mxu1 %vm3459_vm2, %v3458_v23  ;;  %3087 = vmatprep.subr.mxu0 %v3458_v23 }
 0x17b   : > { %3098 = vmatprep.subr.mxu1 %v3458_v23  ;;  %3085 = vmatmul.mubr.msk.f32.vlgmr.msra.gmra.mxu1 %vm676_vm1, %v3668_v30 }
 0x17c   : > { %3088 = vmatpush3.msra.mxu0 %v563_v39  ;;  %3099 = vmatpush3.msra.mxu1 %v567_v40  ;;  %s2939_s12 = sshll.u32 %s4043_s20, 7 }
 0x17d   : > { %3089 = vmatprep.subr.mxu0 %v3458_v23  ;;  %3100 = vmatprep.subr.mxu1 %v3458_v23 }
 0x17e   : > { %3090 = vmatpush3.msra.mxu0 %v562_v41  ;;  %3101 = vmatpush3.msra.mxu1 %v566_v42  ;;  %v2902_v41 = vld [vmem:[%s3620_s28 + $0x8] ss:$0 sm:$0xff] }
 0x17f   : > { %3091 = vmatprep.subr.mxu0 %v3458_v23  ;;  %3102 = vmatprep.subr.mxu1 %v3458_v23 }
 0x180   : > { %3092 = vmatpush3.msra.mxu0 %v561_v43  ;;  %3103 = vmatpush3.msra.mxu1 %v565_v44 }
 0x181   : > { %3093 = vmatprep.subr.mxu0 %v3458_v23  ;;  %3104 = vmatprep.subr.mxu1 %v3458_v23 }
 0x182   : > { %3094 = vmatpush3.msra.mxu0 %v560_v45  ;;  %3095 = vmatprep.mubr.msk.f32.mxu0 %vm3459_vm2, %v3458_v23  ;;  %v2903_v45 = vld [vmem:[%s3620_s28 + $0x9] ss:$0 sm:$0xff] }
 0x183   : > { %3105 = vmatpush3.msra.mxu1 %v564_v46  ;;  %3096 = vmatmul.mubr.msk.f32.vlgmr.msra.gmra.mxu0 %vm676_vm1, %v3668_v30 }
 0x184   : > { %3106 = vmatprep.mubr.msk.f32.mxu1 %vm3459_vm2, %v3458_v23  ;;  %3109 = vmatprep.subr.mxu0 %v3458_v23 }
 0x185   : > { %3120 = vmatprep.subr.mxu1 %v3458_v23  ;;  %3107 = vmatmul.mubr.msk.f32.vlgmr.msra.gmra.mxu1 %vm676_vm1, %v3668_v30 }
 0x186   : > { %3110 = vmatpush3.msra.mxu0 %v571_v47  ;;  %3121 = vmatpush3.msra.mxu1 %v575_v48 }
 0x187   : > { %3111 = vmatprep.subr.mxu0 %v3458_v23  ;;  %3122 = vmatprep.subr.mxu1 %v3458_v23 }
 0x188   : > { %3112 = vmatpush3.msra.mxu0 %v570_v49  ;;  %3123 = vmatpush3.msra.mxu1 %v574_v50 }
 0x189   : > { %3113 = vmatprep.subr.mxu0 %v3458_v23  ;;  %3124 = vmatprep.subr.mxu1 %v3458_v23 }
 0x18a   : > { %3114 = vmatpush3.msra.mxu0 %v569_v51  ;;  %3125 = vmatpush3.msra.mxu1 %v573_v52 }
 0x18b   : > { %3115 = vmatprep.subr.mxu0 %v3458_v23  ;;  %3126 = vmatprep.subr.mxu1 %v3458_v23 }
 0x18c   : > { %3116 = vmatpush3.msra.mxu0 %v568_v53  ;;  %3117 = vmatprep.mubr.msk.f32.mxu0 %vm3459_vm2, %v3458_v23  ;;  %v2918_v53 = vld [vmem:[%s4042_s16] ss:$0 sm:$0xff] }
 0x18d   : > { %3127 = vmatpush3.msra.mxu1 %v572_v54  ;;  %3128 = vmatprep.mubr.msk.f32.mxu1 %vm3459_vm2, %v3458_v23 }
 0x18e   : > { %3118 = vmatmul.mubr.msk.f32.vlgmr.msra.gmra.mxu0 %vm676_vm1, %v3668_v30  ;;  %3129 = vmatmul.mubr.msk.f32.vlgmr.msra.gmra.mxu1 %vm676_vm1, %v3668_v30 }
 0x18f   : > { %3131 = vmatprep.subr.mxu0 %v3458_v23  ;;  %3139 = vmatprep.mubr.msk.f32.mxu0 %vm3459_vm2, %v3458_v23 }
 0x190   : > { %3142 = vmatprep.subr.mxu1 %v3458_v23  ;;  %3150 = vmatprep.mubr.msk.f32.mxu1 %vm3459_vm2, %v3458_v23 }
 0x191   : > { %3132 = vmatpush3.msra.mxu0 %v579_v55  ;;  %3143 = vmatpush3.msra.mxu1 %v583_v60 }
 0x192   : > { %3133 = vmatprep.subr.mxu0 %v3458_v23  ;;  %3144 = vmatprep.subr.mxu1 %v3458_v23 }
 0x193   : > { %3134 = vmatpush3.msra.mxu0 %v578_v56  ;;  %3145 = vmatpush3.msra.mxu1 %v582_v62 }
 0x194   : > { %3135 = vmatprep.subr.mxu0 %v3458_v23  ;;  %3146 = vmatprep.subr.mxu1 %v3458_v23 }
 0x195   : > { %3136 = vmatpush3.msra.mxu0 %v577_v57  ;;  %3147 = vmatpush3.msra.mxu1 %v581_v0 }
 0x196   : > { %3137 = vmatprep.subr.mxu0 %v3458_v23  ;;  %3148 = vmatprep.subr.mxu1 %v3458_v23 }
 0x197   : > { %3138 = vmatpush3.msra.mxu0 %v576_v58  ;;  %3149 = vmatpush3.msra.mxu1 %v580_v2 }
 0x198   : > { %3140 = vmatmul.mubr.msk.f32.vlgmr.msra.gmra.mxu0 %vm676_vm1, %v3668_v30  ;;  %3153 = vmatprep.subr.mxu0 %v3458_v23 }
 0x199   : > { %3154 = vmatpush3.msra.mxu0 %v587_v59  ;;  %3161 = vmatprep.mubr.msk.f32.mxu0 %vm3459_vm2, %v3458_v23 }
 0x19a   : > { %3155 = vmatprep.subr.mxu0 %v3458_v23  ;;  %3164 = vmatprep.subr.mxu1 %v3458_v23 }
 0x19b   : > { %3156 = vmatpush3.msra.mxu0 %v586_v61  ;;  %3151 = vmatmul.mubr.msk.f32.vlgmr.msra.gmra.mxu1 %vm676_vm1, %v3668_v30 }
 0x19c   : > { %3157 = vmatprep.subr.mxu0 %v3458_v23  ;;  %3165 = vmatpush3.msra.mxu1 %v591_v3 }
 0x19d   : > { %3158 = vmatpush3.msra.mxu0 %v585_v63  ;;  %3166 = vmatprep.subr.mxu1 %v3458_v23 }
 0x19e   : > { %3159 = vmatprep.subr.mxu0 %v3458_v23  ;;  %3172 = vmatprep.mubr.msk.f32.mxu1 %vm3459_vm2, %v3458_v23 }
 0x19f   : > { %3160 = vmatpush3.msra.mxu0 %v584_v1  ;;  %3167 = vmatpush3.msra.mxu1 %v590_v4 }
 0x1a0   : > { %3162 = vmatmul.mubr.msk.f32.vlgmr.msra.gmra.mxu0 %vm676_vm1, %v3668_v30  ;;  %3175 = vmatprep.subr.mxu0 %v3458_v23 }
 0x1a1   : > { %3177 = vmatprep.mubr.msk.f32.mxu0 %vm3459_vm2, %v3458_v23  ;;  %3168 = vmatprep.subr.mxu1 %v3458_v23 }
 0x1a2   : > { %3169 = vmatpush3.msra.mxu1 %v589_v5 }
 0x1a3   : > { %3170 = vmatprep.subr.mxu1 %v3458_v23 }
 0x1a4   : > { %3171 = vmatpush3.msra.mxu1 %v588_v6 }
 0x1a5   : > { %3173 = vmatmul.mubr.msk.f32.vlgmr.msra.gmra.mxu1 %vm676_vm1, %v3668_v30  ;;  %3190 = vmatprep.subr.mxu1 %v3458_v23 }
 0x1a6   : > { %3192 = vmatprep.mubr.msk.f32.mxu1 %vm3459_vm2, %v3458_v23 }
 0x22f   : > { %v746_v7 = vpop.f32.mrf.mxu0 }
 0x230   : > { %v747_v24 = vadd.f32 %v2894_v18, %v746_v7 }
 0x231   : > { %v3053_v8 = vpop.f32.mrf.mxu0  ;;  %v816_v9 = vpop.f32.mrf.mxu1 }
 0x232   : > { %v817_v27 = vadd.f32 %v2895_v26, %v816_v9 }
 0x233   : > { %v3064_v10 = vpop.f32.mrf.mxu1 }
 0x239   : > { %v886_v11 = vpop.f32.mrf.mxu0 }
 0x23a   : > { %v887_v39 = vadd.f32 %v2896_v33, %v886_v11 }
 0x23b   : > { %v3075_v12 = vpop.f32.mrf.mxu0  ;;  %v956_v13 = vpop.f32.mrf.mxu1 }
 0x23c   : > { %v957_v40 = vadd.f32 %v2897_v34, %v956_v13 }
 0x23d   : > { %v3086_v14 = vpop.f32.mrf.mxu1 }
 0x243   : > { %v1026_v16 = vpop.f32.mrf.mxu0 }
 0x244   : > { %v1027_v19 = vadd.f32 %v2898_v15, %v1026_v16 }
 0x245   : > { %v3097_v20 = vpop.f32.mrf.mxu0  ;;  %v1096_v21 = vpop.f32.mrf.mxu1 }
 0x246   : > { %v1097_v22 = vadd.f32 %v2899_v17, %v1096_v21  ;;  %3176 = vmatpush3.xpose.msk.msra.mxu0 %vm1526_vm3, %v1027_v19 }
 0x247   : > { %v3108_v25 = vpop.f32.mrf.mxu1  ;;  %3180 = vmatprep.subr.mxu0 %v3458_v23 }
 0x249   : > { %3178 = vmatmul.mubr.msk.f32.vlgmr.msra.gmra.mxu0 %vm1526_vm3, %v747_v24 }
 0x24a   : > { %3181 = vmatpush3.xpose.msk.msra.mxu0 %vm1526_vm3, %v1097_v22  ;;  %3182 = vmatprep.mubr.msk.f32.mxu0 %vm3459_vm2, %v3458_v23 }
 0x24b   : > { %3185 = vmatprep.subr.mxu0 %v3458_v23 }
 0x24d   : > { %3183 = vmatmul.mubr.msk.f32.vlgmr.msra.gmra.mxu0 %vm1526_vm3, %v817_v27 }
 0x24e   : > { %v1166_v31 = vpop.f32.mrf.mxu0  ;;  %v1236_v32 = vpop.f32.mrf.mxu1  ;;  %3187 = vmatprep.mubr.msk.f32.mxu0 %vm3459_vm2, %v3458_v23 }
 0x24f   : > { %v1167_v35 = vadd.f32 %v2900_v28, %v1166_v31  ;;  %v1237_v36 = vadd.f32 %v2901_v29, %v1236_v32  ;;  %v2904_v31 = vld [vmem:[%s3620_s28 + $0xa] ss:$0 sm:$0xff] }
 0x250   : > { %v3119_v37 = vpop.f32.mrf.mxu0  ;;  %v3130_v38 = vpop.f32.mrf.mxu1 }
 0x251   : > { %3186 = vmatpush3.xpose.msk.msra.mxu0 %vm1526_vm3, %v1167_v35  ;;  %3191 = vmatpush3.xpose.msk.msra.mxu1 %vm1526_vm3, %v1237_v36  ;;  %v2905_v36 = vld [vmem:[%s3620_s28 + $0xb] ss:$0 sm:$0xff] }
 0x252   : > { %3195 = vmatprep.subr.mxu0 %v3458_v23  ;;  %3200 = vmatprep.subr.mxu1 %v3458_v23 }
 0x254   : > { %3188 = vmatmul.mubr.msk.f32.vlgmr.msra.gmra.mxu0 %vm1526_vm3, %v887_v39  ;;  %3193 = vmatmul.mubr.msk.f32.vlgmr.msra.gmra.mxu1 %vm1526_vm3, %v957_v40 }
 0x255   : > { %3197 = vmatprep.mubr.msk.f32.mxu0 %vm3459_vm2, %v3458_v23  ;;  %3202 = vmatprep.mubr.msk.f32.mxu1 %vm3459_vm2, %v3458_v23 }
 0x258   : > { %v1306_v42 = vpop.f32.mrf.mxu0 }
 0x259   : > { %v1307_v43 = vadd.f32 %v2902_v41, %v1306_v42 }
 0x25a   : > { %v3141_v44 = vpop.f32.mrf.mxu0 }
 0x25b   : > { %3196 = vmatpush3.msra.mxu0 %v1307_v43  ;;  %v1376_v47 = vpop.f32.mrf.mxu1  ;;  %v2167_v44 = vld [vmem:[%s3615_s14] sm:$0xff] }
 0x25c   : > { %3205 = vmatprep.subr.mxu0 %v3458_v23  ;;  %v1377_v49 = vadd.f32 %v2903_v45, %v1376_v47  ;;  %v2168_v45 = vld [vmem:[%s3615_s14 + $0x8] sm:$0xff] }
 0x25d   : > { %v3152_v50 = vpop.f32.mrf.mxu1 }
 0x25e   : > { %3201 = vmatpush3.msra.mxu1 %v1377_v49  ;;  %v2170_v49 = vld [vmem:[%s3615_s14 + $0x18] sm:$0xff] }
 0x25f   : > { %3210 = vmatprep.subr.mxu1 %v3458_v23 }
 0x260   : > { %v3837_v46 = vpop.f32.mrf.mxu0 }
 0x261   : > { %v1447_v35 = vadd.f32 %v2904_v31, %v3837_v46  ;;  %v2169_v46 = vld [vmem:[%s3615_s14 + $0x10] sm:$0xff] }
 0x262   : > { %v3163_v48 = vpop.f32.mrf.mxu0 }
 0x265   : > { %v3840_v51 = vpop.f32.mrf.mxu1 }
 0x266   : > { %v1517_v39 = vadd.f32 %v2905_v36, %v3840_v51  ;;  %v2600_v36 = vld [vmem:[%s3635_s10 + $0x38] sm:$0xff] }
 0x267   : > { %v3174_v52 = vpop.f32.mrf.mxu1 }
 0x309   : > { %v1599_v54 = vpop.f32.mrf.mxu0 }
 0x30a   : > { %v1600_v55 = vadd.f32 %v2918_v53, %v1599_v54 }
 0x30b   : > { %v3179_v56 = vpop.f32.mrf.mxu0 }
 0x30c   : > { %v1831_v57 = vsel %vm1526_vm3, %v1600_v55, -inf }
 0x30d   : > { %1832 = vmax.xlane.f32.xlu0 %v1831_v57  ;;  %v1675_v58 = vpop.f32.mrf.mxu0 }
 0x30e   : > { %v1676_v59 = vadd.f32 %v2918_v53, %v1675_v58  ;;  %v2470_v58 = vlaneseq }
 0x30f   : > { %v3184_v60 = vpop.f32.mrf.mxu0 }
 0x310   : > { %v1834_v61 = vsel %vm1526_vm3, %v1676_v59, -inf }
 0x311   : > { %1835 = vmax.xlane.f32.xlu0 %v1834_v61  ;;  %v3893_v61 = vshrl.u32 %v2470_v58, 7 }
 0x314   : > { %v1827_v62 = vpop.f32.mrf.mxu1  ;;  %v1751_v63 = vpop.f32.mrf.mxu0 }
 0x315   : > { %v1752_v0 = vadd.f32 %v2918_v53, %v1751_v63  ;;  %v1828_v3 = vadd.f32 %v2918_v53, %v1827_v62 }
 0x316   : > { %v3189_v1 = vpop.f32.mrf.mxu0  ;;  %v3194_v2 = vpop.f32.mrf.mxu1 }
 0x317   : > { %v1837_v4 = vsel %vm1526_vm3, %v1752_v0, -inf  ;;  %v1840_v5 = vsel %vm1526_vm3, %v1828_v3, -inf }
 0x318   : > { %1838 = vmax.xlane.f32.xlu1 %v1837_v4 }
 0x31c   : > { %1841 = vmax.xlane.f32.xlu1 %v1840_v5 }
 0x396   : > { %v1833_v6 = vpop.xlane.xlu0 %1832 }
 0x397   : > { %v1843_v7 = vsub.f32 %v1600_v55, %v1833_v6 }
 0x399   : > { %v1847_v8 = vmul.f32 1.442695, %v1843_v7 }
 0x39a   : > { %v1836_v9 = vpop.xlane.xlu0 %1835 }
 0x39b   : > { %3342 = vpow2.f32 %v1847_v8  ;;  %v1844_v10 = vsub.f32 %v1676_v59, %v1836_v9 }
 0x39d   : > { %v1849_v11 = vmul.f32 1.442695, %v1844_v10 }
 0x39f   : > { %3344 = vpow2.f32 %v1849_v11 }
 0x3a1   : > { %v1839_v12 = vpop.xlane.xlu1 %1838 }
 0x3a2   : > { %v1845_v13 = vsub.f32 %v1752_v0, %v1839_v12  ;;  %v2472_v0 = vsub.s32 0, %v3893_v61 }
 0x3a4   : > { %v1851_v14 = vmul.f32 1.442695, %v1845_v13 }
 0x3a5   : > { %v1842_v15 = vpop.xlane.xlu1 %1841 }
 0x3a6   : > { %3346 = vpow2.f32 %v1851_v14  ;;  %v1846_v16 = vsub.f32 %v1828_v3, %v1842_v15  ;;  %v3900_v3 = vld [vmem:[%s3641_s29] sm:$0x3f] }
 0x3a7   : > { %v2473_v8 = vrot.slane %v3900_v3, %v2472_v0 }
 0x3a8   : > { %v3343_v17 = vpop.eup %3342  ;;  %v1853_v18 = vmul.f32 1.442695, %v1846_v16 }
 0x3a9   : > { %v1855_v19 = vsel %vm1526_vm3, %v3343_v17, 0.0 }
 0x3aa   : > { %3348 = vpow2.f32 %v1853_v18  ;;  %1856 = vadd.xlane.f32.xlu0 %v1855_v19 }
 0x3ac   : > { %v3345_v20 = vpop.eup %3344 }
 0x3ad   : > { %v1858_v21 = vsel %vm1526_vm3, %v3345_v20, 0.0 }
 0x3ae   : > { %1859 = vadd.xlane.f32.xlu1 %v1858_v21  ;;  %v2502_v21 = vld [vmem:[%s3625_s22 + $0x10] sm:$0xff] }
 0x3b3   : > { %v3347_v22 = vpop.eup %3346 }
 0x3b4   : > { %v1861_v24 = vsel %vm1526_vm3, %v3347_v22, 0.0 }
 0x3b5   : > { %1862 = vadd.xlane.f32.xlu0 %v1861_v24 }
 0x3b7   : > { %v3349_v25 = vpop.eup %3348 }
 0x3b8   : > { %v1864_v26 = vsel %vm1526_vm3, %v3349_v25, 0.0 }
 0x3b9   : > { %1865 = vadd.xlane.f32.xlu1 %v1864_v26 }
 0x433   : > { %v1857_v27 = vpop.xlane.xlu0 %1856 }
 0x434   : > { %3350 = vrcp.f32 %v1857_v27  ;;  %v2492_v27 = vsub.s32 1, %v3893_v61 }
 0x437   : > { %v1860_v28 = vpop.xlane.xlu1 %1859 }
 0x438   : > { %3352 = vrcp.f32 %v1860_v28  ;;  %v2497_v28 = vsub.s32 2, %v3893_v61 }
 0x43e   : > { %v1863_v29 = vpop.xlane.xlu0 %1862 }
 0x43f   : > { %3354 = vrcp.f32 %v1863_v29  ;;  %v2493_v29 = vrot.slane %v3900_v3, %v2492_v27 }
 0x441   : > { %v3351_v32 = vpop.eup %3350 }
 0x442   : > { %v1866_v33 = vpop.xlane.xlu1 %1865  ;;  %v1871_v34 = vmul.f32 %v3351_v32, %v3343_v17 }
 0x443   : > { %3356 = vrcp.f32 %v1866_v33  ;;  %v2498_v33 = vrot.slane %v3900_v3, %v2497_v28 }
 0x444   : > { %3198 = vmatmul.mubr.msk.f32.vlgmr.msra.gmra.mxu0 %vm1526_vm3, %v1871_v34 }
 0x445   : > { %v3353_v37 = vpop.eup %3352  ;;  %3206 = vmatpush3.msra.mxu0 %v1447_v35  ;;  %3207 = vmatprep.mubr.msk.f32.mxu0 %vm3459_vm2, %v3458_v23 }
 0x446   : > { %v1872_v38 = vmul.f32 %v3353_v37, %v3345_v20  ;;  %3215 = vmatprep.subr.mxu0 %v3458_v23  ;;  %v2503_v20 = vld [vmem:[%s3625_s22 + $0x18] sm:$0xff]  ;;  %v2599_v37 = vld [vmem:[%s3635_s10 + $0x30] sm:$0xff] }
 0x448   : > { %3203 = vmatmul.mubr.msk.f32.vlgmr.msra.gmra.mxu1 %vm1526_vm3, %v1872_v38  ;;  %v2598_v38 = vld [vmem:[%s3635_s10 + $0x28] sm:$0xff] }
 0x449   : > { %3211 = vmatpush3.msra.mxu1 %v1517_v39  ;;  %3212 = vmatprep.mubr.msk.f32.mxu1 %vm3459_vm2, %v3458_v23  ;;  %v2597_v39 = vld [vmem:[%s3635_s10 + $0x20] sm:$0xff] }
 0x44a   : > { %3220 = vmatprep.subr.mxu1 %v3458_v23 }
 0x44c   : > { %v3355_v40 = vpop.eup %3354 }
 0x44d   : > { %v1873_v41 = vmul.f32 %v3355_v40, %v3347_v22  ;;  %v2501_v22 = vld [vmem:[%s3625_s22 + $0x8] sm:$0xff]  ;;  %v2596_v40 = vld [vmem:[%s3635_s10 + $0x18] sm:$0xff] }
 0x44f   : > { %3208 = vmatmul.mubr.msk.f32.vlgmr.msra.gmra.mxu0 %vm1526_vm3, %v1873_v41  ;;  %v2595_v41 = vld [vmem:[%s3635_s10 + $0x10] sm:$0xff] }
 0x450   : > { %v3357_v42 = vpop.eup %3356  ;;  %3217 = vmatprep.mubr.msk.f32.mxu0 %vm3459_vm2, %v3458_v23  ;;  %3216 = vmatpush3.msra.mxu0 %v2167_v44  ;;  %v2935_v44 = vld [vmem:[%s499_s13] ss:$0 sm:$0xff]  ;;  %s4047_s13 = sand.u32 1, %s4044_s24  }
 0x451   : > { %v1874_v43 = vmul.f32 %v3357_v42, %v3349_v25  ;;  %3225 = vmatprep.subr.mxu0 %v3458_v23  ;;  %v2594_v42 = vld [vmem:[%s3635_s10 + $0x8] sm:$0xff]  ;;  %s2705_s18 = scalar_lea.sflag [#allocation3], %s4047_s13 }
 0x453   : > { %3213 = vmatmul.mubr.msk.f32.vlgmr.msra.gmra.mxu1 %vm1526_vm3, %v1874_v43  ;;  %v2593_v43 = vld [vmem:[%s3635_s10] sm:$0xff]  ;;  %s3460_s10 = smov [#allocation2]  }
 0x454   : > { %3222 = vmatprep.mubr.msk.f32.mxu1 %vm3459_vm2, %v3458_v23  ;;  %3221 = vmatpush3.msra.mxu1 %v2168_v45  ;;  %s3368_s25 = sshll.u32 %s3460_s10, 4  ;;  %s3369_s25 = int_to_ptr.vmem [resolvable:$false] %s3368_s25 }
 0x455   : > { %3230 = vmatprep.subr.mxu1 %v3458_v23  ;;  %s3370_s17 = scalar_lea.vmem %s3369_s25, 256  ;;  %p3371_p5 = scmp.lt.s32.totalorder %s2719_s21, %s3369_s25 }
 0x456   : > { %p3372_p6 = scmp.lt.s32.totalorder %s3370_s17, %s3364_s26 }
 0x458   : > { %p3373_p7 = por %p3372_p6, %p3371_p5 }
 0x45a   : > { %p3374_p8 = pnand %p3373_p7, %p3367_p4 }
 0x504   : > { %v1944_v47 = vpop.f32.mrf.mxu0 }
 0x505   : > { %3218 = vmatmul.mubr.msk.f32.vlgmr.msra.gmra.mxu0 %vm1526_vm3, %v1944_v47 }
 0x506   : > { %v3199_v48 = vpop.f32.mrf.mxu0  ;;  %3226 = vmatpush3.msra.mxu0 %v2169_v46  ;;  %3227 = vmatprep.mubr.msk.f32.mxu0 %vm3459_vm2, %v3458_v23 }
 0x507   : > { %3235 = vmatprep.subr.mxu0 %v3458_v23 }
 0x508   : > { %v2017_v50 = vpop.f32.mrf.mxu1 }
 0x509   : > { %3223 = vmatmul.mubr.msk.f32.vlgmr.msra.gmra.mxu1 %vm1526_vm3, %v2017_v50 }
 0x50a   : > { %v3204_v51 = vpop.f32.mrf.mxu1  ;;  %3231 = vmatpush3.msra.mxu1 %v2170_v49  ;;  %3232 = vmatprep.mubr.msk.f32.mxu1 %vm3459_vm2, %v3458_v23 }
 0x50b   : > { %3246 = vmatprep.subr.mxu1 %v3458_v23 }
 0x50f   : > { %v2090_v52 = vpop.f32.mrf.mxu0 }
 0x510   : > { %3228 = vmatmul.mubr.msk.f32.vlgmr.msra.gmra.mxu0 %vm1526_vm3, %v2090_v52 }
 0x511   : > { %v3209_v53 = vpop.f32.mrf.mxu0  ;;  %3243 = vmatprep.mubr.msk.f32.mxu0 %vm3459_vm2, %v3458_v23  ;;  %3236 = vmatpush3.msra.mxu0 %v2503_v20 }
 0x512   : > { %3237 = vmatprep.subr.mxu0 %v3458_v23 }
 0x513   : > { %v2163_v54 = vpop.f32.mrf.mxu1  ;;  %3238 = vmatpush3.msra.mxu0 %v2502_v21 }
 0x514   : > { %3233 = vmatmul.mubr.msk.f32.vlgmr.msra.gmra.mxu1 %vm1526_vm3, %v2163_v54  ;;  %3239 = vmatprep.subr.mxu0 %v3458_v23 }
 0x515   : > { %v3214_v55 = vpop.f32.mrf.mxu1  ;;  %3262 = vmatprep.mubr.msk.f32.mxu1 %vm3459_vm2, %v3458_v23  ;;  %3240 = vmatpush3.msra.mxu0 %v2501_v22 }
 0x516   : > { %3241 = vmatprep.subr.mxu0 %v3458_v23  ;;  %3247 = vmatpush3.msra.mxu1 %v2600_v36 }
 0x517   : > { %3248 = vmatprep.subr.mxu1 %v3458_v23 }
 0x518   : > { %3249 = vmatpush3.msra.mxu1 %v2599_v37 }
 0x519   : > { %3250 = vmatprep.subr.mxu1 %v3458_v23 }
 0x51a   : > { %3251 = vmatpush3.msra.mxu1 %v2598_v38 }
 0x51b   : > { %3252 = vmatprep.subr.mxu1 %v3458_v23 }
 0x51c   : > { %3253 = vmatpush3.msra.mxu1 %v2597_v39 }
 0x51d   : > { %3254 = vmatprep.subr.mxu1 %v3458_v23 }
 0x51e   : > { %3255 = vmatpush3.msra.mxu1 %v2596_v40 }
 0x51f   : > { %3256 = vmatprep.subr.mxu1 %v3458_v23 }
 0x520   : > { %3257 = vmatpush3.msra.mxu1 %v2595_v41 }
 0x521   : > { %3258 = vmatprep.subr.mxu1 %v3458_v23 }
 0x522   : > { %3259 = vmatpush3.msra.mxu1 %v2594_v42 }
 0x523   : > { %3260 = vmatprep.subr.mxu1 %v3458_v23 }
 0x524   : > { %3261 = vmatpush3.msra.mxu1 %v2593_v43 }
 0x5c5   : > { %v2240_v56 = vpop.f32.mrf.mxu0 }
 0x5c6   : > { %v2463_v1 = vsel %vm676_vm1, %v2240_v56, 0.0  ;;  %v2603_v56 = vsub.s32 3, %v3893_v61 }
 0x5c7   : > { %v3219_v57 = vpop.f32.mrf.mxu0 }
 0x5c8   : > { %v2604_v57 = vrot.slane %v3900_v3, %v2603_v56 }
 0x5c9   : > { %v2313_v59 = vpop.f32.mrf.mxu1 }
 0x5ca   : > { %v2464_v62 = vsel %vm676_vm1, %v2313_v59, 0.0 }
 0x5cb   : > { %v3224_v60 = vpop.f32.mrf.mxu1  ;;  %v2465_v4 = vadd.f32 %v2464_v62, %v2463_v1 }
 0x5d0   : > { %v2386_v63 = vpop.f32.mrf.mxu0 }
 0x5d1   : > { %v2466_v2 = vsel %vm676_vm1, %v2386_v63, 0.0 }
 0x5d2   : > { %v3229_v5 = vpop.f32.mrf.mxu0  ;;  %v2467_v6 = vadd.f32 %v2466_v2, %v2465_v4 }
 0x5d4   : > { %v2459_v7 = vpop.f32.mrf.mxu1 }
 0x5d5   : > { %v2468_v9 = vsel %vm676_vm1, %v2459_v7, 0.0 }
 0x5d6   : > { %v2469_v10 = vadd.f32 %v2468_v9, %v2467_v6  ;;  %v3234_v11 = vpop.f32.mrf.mxu1  ;;  %v2695_v9 = vsub.s32 4, %v3893_v61 }
 0x5d8   : > { %v2474_v12 = vadd.f32 %v2473_v8, %v2469_v10  ;;  %v2700_v10 = vsub.s32 5, %v3893_v61  ;;  %v2696_v11 = vrot.slane %v3900_v3, %v2695_v9 }
 0x5da   : > { %v2475_v13 = vadd.f32 %v2474_v12, %v3668_v30  ;;  %v2500_v30 = vld [vmem:[%s3625_s22] sm:$0xff]  ;;  %s2716_s22 = scalar_lea.hbm %s4046_s30, %s2939_s12 }
 0x5db   : > { %3242 = vmatpush3.msra.mxu0 %v2500_v30 }
 0x5dc   : > { %v2476_v14 = vsel %vm676_vm1, %v2475_v13, 0.0 }
 0x5dd   : > { %2477 = vadd.xlane.f32.xlu0 %v2476_v14  ;;  %v2701_v14 = vrot.slane %v3900_v3, %v2700_v10 }
 0x666   : > { %v2478_v15 = vpop.xlane.xlu0 %2477 }
 0x667   : > { %v2480_v16 = vmul.f32 0.03125, %v2478_v15 }
 0x669   : > { %v2481_v17 = vsub.f32 %v2475_v13, %v2480_v16 }
 0x66b   : > { %v2482_v18 = vmul.f32 %v2481_v17, %v2481_v17 }
 0x66d   : > { %v2483_v19 = vsel %vm676_vm1, %v2482_v18, 0.0 }
 0x66e   : > { %2484 = vadd.xlane.f32.xlu1 %v2483_v19 }
 0x6f7   : > { %v2485_v24 = vpop.xlane.xlu1 %2484 }
 0x6f8   : > { %v2486_v25 = vmul.f32 0.03125, %v2485_v24 }
 0x6fa   : > { %v2487_v26 = vadd.f32 1e-12, %v2486_v25 }
 0x6fc   : > { %3358 = vrsqrt.f32 %v2487_v26 }
 0x709   : > { %v3359_v31 = vpop.eup %3358 }
 0x70a   : > { %v2489_v32 = vmul.f32 %v3359_v31, %v2481_v17 }
 0x70c   : > { %v2494_v34 = vmul.f32 %v2493_v29, %v2489_v32 }
 0x70e   : > { %v2499_v35 = vadd.f32 %v2498_v33, %v2494_v34 }
 0x710   : > { %3244 = vmatmul.mubr.msk.f32.vlgmr.msra.gmra.mxu0 %vm676_vm1, %v2499_v35 }
 0x7d0   : > { %v2580_v45 = vpop.f32.mrf.mxu0 }
 0x7d1   : > { %v2581_v46 = vadd.f32 %v2935_v44, %v2580_v45 }
 0x7d2   : > { %v3245_v47 = vpop.f32.mrf.mxu0 }
 0x7d3   : > { %v2584_v48 = vmul.f32 %v2581_v46, %v2581_v46 }
 0x7d5   : > { %v2585_v49 = vmul.f32 %v2584_v48, %v2581_v46 }
 0x7d7   : > { %v2586_v50 = vmul.f32 0.044715, %v2585_v49 }
 0x7d9   : > { %v2587_v51 = vadd.f32 %v2586_v50, %v2581_v46 }
 0x7db   : > { %v2588_v52 = vmul.f32 0.7978846, %v2587_v51 }
 0x7dd   : > { %3360 = vtanh.f32 %v2588_v52 }
 0x7ea   : > { %v3361_v53 = vpop.eup %3360 }
 0x7eb   : > { %v2590_v54 = vadd.f32 1.0, %v3361_v53 }
 0x7ed   : > { %v2591_v55 = vmul.f32 0.5, %v2590_v54 }
 0x7ef   : > { %v2592_v23 = vmul.f32 %v2591_v55, %v2581_v46 }
 0x7f1   : > { %3263 = vmatmul.mubr.msk.f32.vlgmr.msra.gmra.mxu1 %vm2605_vm4, %v2592_v23 }
 0x8b1   : > { %v2675_v58 = vpop.f32.mrf.mxu1 }
 0x8b2   : > { %v2676_v59 = vadd.f32 %v2675_v58, %v2604_v57 }
 0x8b3   : > { %v3264_v60 = vpop.f32.mrf.mxu1 }
 0x8b4   : > { %v2679_v62 = vadd.f32 %v2676_v59, %v2499_v35 }
 0x8b6   : > { %v2680_v63 = vsel %vm676_vm1, %v2679_v62, 0.0 }
 0x8b7   : > { %2681 = vadd.xlane.f32.xlu0 %v2680_v63 }
 0x940   : > { %v2682_v0 = vpop.xlane.xlu0 %2681 }
 0x941   : > { %v2683_v1 = vmul.f32 0.03125, %v2682_v0 }
 0x943   : > { %v2684_v2 = vsub.f32 %v2679_v62, %v2683_v1 }
 0x945   : > { %v2685_v4 = vmul.f32 %v2684_v2, %v2684_v2 }
 0x947   : > { %v2686_v5 = vsel %vm676_vm1, %v2685_v4, 0.0 }
 0x948   : > { %2687 = vadd.xlane.f32.xlu1 %v2686_v5 }
 0x9d1   : > { %v2688_v6 = vpop.xlane.xlu1 %2687 }
 0x9d2   : > { %v2689_v7 = vmul.f32 0.03125, %v2688_v6 }
 0x9d4   : > { %v2690_v8 = vadd.f32 1e-12, %v2689_v7 }
 0x9d6   : > { %3362 = vrsqrt.f32 %v2690_v8 }
 0x9e3   : > { %v3363_v12 = vpop.eup %3362 }
 0x9e4   : > { %v2692_v13 = vmul.f32 %v3363_v12, %v2684_v2 }
 0x9e6   : > { %v2697_v15 = vmul.f32 %v2696_v11, %v2692_v13 }
 0x9e8   : > { %v2702_v16 = vadd.f32 %v2701_v14, %v2697_v15 }
 0x9ea   : > { %2703 = vst.msk [vmem:[%s3643_s27] sm:$0xff] %vm676_vm1, %v2702_v16 }
 0x9eb   : > { %3377 = shalt.err (!%p3374_p8)
}
 0x9ec   : > { %s3378_s29 = scalar_lea.hbm %s2716_s22, 128  ;;  %s3382_s3 = scalar_lea.hbm %s4046_s30, 256 }
 0x9ed   : > { %p3379_p10 = scmp.ne.s32.totalorder %s2716_s22, %s3378_s29  ;;  %p3383_p13 = scmp.lt.s32.totalorder %s2716_s22, %s4046_s30 }
 0x9ee   : > { %p3384_p0 = scmp.lt.s32.totalorder %s3382_s3, %s3378_s29 }
 0x9ef   : > { %p3380_p11 = pnand %p3379_p10, %p3565_p3 }
 0x9f0   : > { %p3385_p1 = por %p3384_p0, %p3383_p13 }
 0x9f1   : > { %p3381_p12 = pneg %p3380_p11 }
 0x9f3   : > { %p3386_p2 = pnand %p3385_p1, %p3381_p12 }
 0x9f5   : > { %3389 = shalt.err (!%p3386_p2)
}
 0x9f6   : > { %3267 = dma.vmem_to_hbm [thread:$0]  (%p3565_p3), %s2719_s21, 128, %s2716_s22, %s2705_s18  }
 0x9f7 PF: > { %s4048_s16 = sld [smem:[#allocation11_spill]] }
 0x9f8   : > { %s4049_s14 = sld [smem:[#allocation5_spill]] }
 0x9fd   : > { %p3273_p4 = scmp.ge.s32.totalorder %s4048_s16, 2 }
 0x9fe   : > { %s2730_s20 = sand.u32 1, %s4049_s14  }
 0x9ff   : > { %p3270_p5 = pnand %p3273_p4, %p3575_p9  ;;  %s2731_s24 = scalar_lea.sflag [#allocation3], %s2730_s20 }
 0xa01   : > { %p3271_p6 = pneg %p3270_p5 }
 0xa03   : > { %3423 = dma.done.wait (%p3271_p6), %s2731_s24, 128  }
 0xa04   : > { %3425 = vsyncadd (%p3271_p6), %s2731_s24, 4294967168  ;;  %s23_s20 = sadd.s32 1, %s4048_s16   ;;  %s4051_s13 = sld [smem:[#allocation6_spill]] }
 0xa05   : > { %p20_p7 = scmp.ge.s32.totalorder %s23_s20, 6   ;;  %s4052_s14 = sld [smem:[#allocation7_spill]] }
 0xa06   : > { %s4053_s15 = sld [smem:[#allocation16_spill]] }
 0xa07   : > { %s4054_s16 = sld [smem:[#allocation9_spill]]  ;;  %22 = sbr.rel (!%p20_p7) target bundleno = 10 (0xa), region = 123 }
 0xa08   : > { %s4055_s17 = sld [smem:[#allocation10_spill]] }
 0xa09   : > { %s4056_s18 = sld [smem:[#allocation12_spill]] }
 0xa0a   : > { %s4057_s19 = sld [smem:[#allocation14_spill]] }
 0xa0c   :  { %2736 = vsyncpa [#allocation3], 1 }
 0xa0d   :  { %2738 = vsyncpa [#allocation3 + $0x1], 1 }

</bundles_post_ra>
